<compile_context>
chip_gen: v7x
topology: tpu7x:2x2x1
jax: 0.10.0
libtpu: 0.0.40
codegen_flags: <defaults>
</compile_context>

<pallas_src>
import functools
from typing import NamedTuple

import jax
import jax.numpy as jnp
from jax.experimental import pallas as pl
from jax.experimental.pallas import tpu as pltpu

BOTTLENECK = 300
H_LAYER = 600

# Explicit scoped-VMEM budget: >> actual footprint (~15 MB double-buffered with
# default tiles), < v7x 64 MiB physical, > v5e 16 MiB default scoped limit.
_VMEM_LIMIT_BYTES = 48 * 1024 * 1024


def _cdiv(a, b):
    return -(-a // b)


def _round_up(n, m):
    return ((n + m - 1) // m) * m


def _column_tiling(n_items, block_n):
    """Lane-aligned output width, column tile size, padded W2 width, #tiles."""
    assert block_n % 128 == 0, "block_n must be a multiple of 128"
    np2 = _round_up(n_items, 128)          # logical (lane-aligned) output width
    n_jt = _cdiv(np2, block_n)             # number of column tiles
    bn = _round_up(_cdiv(np2, n_jt), 128)  # evenly sized tile, multiple of 128
    npad = n_jt * bn                       # padded W2 / b2 width (>= np2)
    return np2, bn, npad, n_jt


def _batch_tiling(batch, block_b):
    """Batch tile size (multiple of 16 for bf16 sublane packing) and padding."""
    assert block_b % 16 == 0, "block_b must be a multiple of 16"
    n_bt = _cdiv(batch, block_b)
    bb = _round_up(_cdiv(batch, n_bt), 16)
    bp = n_bt * bb
    return bb, bp, n_bt


class DecoderParams(NamedTuple):
    w1p: jax.Array  # (Kp, Hp)   compute dtype (bf16)
    b1p: jax.Array  # (1, Hp)    float32
    w2p: jax.Array  # (Hp, Npad) compute dtype (bf16)
    b2p: jax.Array  # (1, Npad)  float32


def prepare_decoder_params(w1, b1, w2, b2, *, block_n=2048,
                           compute_dtype=jnp.bfloat16):
    """Pad + cast weights ONCE (hoisted out of the per-forward path)."""
    K, H = w1.shape
    _, N = w2.shape
    Kp = _round_up(K, 128)
    Hp = _round_up(H, 128)
    _, _, Npad, _ = _column_tiling(N, block_n)

    w1p = jnp.zeros((Kp, Hp), compute_dtype).at[:K, :H].set(
        w1.astype(compute_dtype))
    b1p = jnp.zeros((1, Hp), jnp.float32).at[:, :H].set(
        jnp.reshape(b1, (1, H)).astype(jnp.float32))
    w2p = jnp.zeros((Hp, Npad), compute_dtype).at[:H, :N].set(
        w2.astype(compute_dtype))
    b2p = jnp.zeros((1, Npad), jnp.float32).at[:, :N].set(
        jnp.reshape(b2, (1, N)).astype(jnp.float32))
    return DecoderParams(w1p, b1p, w2p, b2p)


def _layer1_kernel(x_ref, w1_ref, b1_ref, h_ref):
    # bf16 MXU matmul, f32 accumulation; bias + tanh in f32; store compute dtype.
    h = jnp.dot(x_ref[...], w1_ref[...], preferred_element_type=jnp.float32)
    h_ref[...] = jnp.tanh(h + b1_ref[...]).astype(h_ref.dtype)


def _layer2_kernel(h_ref, w2_ref, b2_ref, o_ref):
    y = jnp.dot(h_ref[...], w2_ref[...], preferred_element_type=jnp.float32)
    o_ref[...] = (y + b2_ref[...]).astype(o_ref.dtype)


@functools.partial(jax.jit,
                   static_argnames=("n_items", "block_b", "block_n", "out_dtype"))
def decoder_forward(x, params, *, n_items, block_b=512, block_n=2048,
                    out_dtype=None):
    """Fused decoder forward. x: (B, bottleneck); params from prepare_decoder_params."""
    w1p, b1p, w2p, b2p = params
    B, K = x.shape
    Kp, Hp = w1p.shape
    compute_dtype = w1p.dtype
    out_dtype = x.dtype if out_dtype is None else out_dtype

    Np2, bn, Npad, n_jt = _column_tiling(n_items, block_n)
    assert w2p.shape[1] == Npad, (
        "params were prepared with a different block_n than decoder_forward")
    bb, Bp, n_bt = _batch_tiling(B, block_b)

    # Per-call activation padding (small: B x 300 -> Bp x 384). Zero pad rows
    # produce tanh(b1) hidden rows -> finite garbage output rows, sliced off.
    xp = jnp.zeros((Bp, Kp), compute_dtype).at[:B, :K].set(x.astype(compute_dtype))

    # ---- Stage 1: h = tanh(x @ W1 + b1), once for the whole batch ----------
    h = pl.pallas_call(
        _layer1_kernel,
        out_shape=jax.ShapeDtypeStruct((Bp, Hp), compute_dtype),
        grid_spec=pltpu.PrefetchScalarGridSpec(
            num_scalar_prefetch=0,
            grid=(n_bt,),
            in_specs=[
                pl.BlockSpec((bb, Kp), lambda i: (i, 0)),   # x batch tile
                pl.BlockSpec((Kp, Hp), lambda i: (0, 0)),   # W1 (grid-invariant)
                pl.BlockSpec((1, Hp), lambda i: (0, 0)),    # b1 (grid-invariant)
            ],
            out_specs=pl.BlockSpec((bb, Hp), lambda i: (i, 0)),
        ),
        compiler_params=pltpu.CompilerParams(
            dimension_semantics=("parallel",),
            vmem_limit_bytes=_VMEM_LIMIT_BYTES),
    )(xp, w1p, b1p)

    # ---- Stage 2: out = h @ W2 + b2 -----------------------------------------
    # Grid: j (W2 column tile) OUTER, i (batch tile) INNER.  W2's block index
    # (0, j) is constant across i, so each W2 column tile is DMA'd from HBM
    # exactly once and reused for every batch tile.  Each (j, i) step writes a
    # disjoint output tile -> no cross-step state -> both axes "parallel".
    out = pl.pallas_call(
        _layer2_kernel,
        out_shape=jax.ShapeDtypeStruct((Bp, Np2), out_dtype),
        grid_spec=pltpu.PrefetchScalarGridSpec(
            num_scalar_prefetch=0,
            grid=(n_jt, n_bt),
            in_specs=[
                pl.BlockSpec((bb, Hp), lambda j, i: (i, 0)),   # h batch tile
                pl.BlockSpec((Hp, bn), lambda j, i: (0, j)),   # W2 column tile
                pl.BlockSpec((1, bn), lambda j, i: (0, j)),    # b2 column tile
            ],
            # Last column tile may be partial (Np2 % bn != 0): OOB writes are
            # masked, so the output is padded only to a 128 multiple.
            out_specs=pl.BlockSpec((bb, bn), lambda j, i: (i, j)),
        ),
        compiler_params=pltpu.CompilerParams(
            dimension_semantics=("parallel", "parallel"),
            vmem_limit_bytes=_VMEM_LIMIT_BYTES),
    )(h, w2p, b2p)

    if Bp != B or Np2 != n_items:
        out = out[:B, :n_items]
    return out


def init_decoder_params(key, x_layer, dtype=jnp.float32):
    """Deterministic init mimicking torch.nn.Linear default (uniform +-1/sqrt(fan_in))."""
    k1, k2, k3, k4 = jax.random.split(key, 4)
    lim1 = 1.0 / jnp.sqrt(jnp.asarray(BOTTLENECK, dtype))
    lim2 = 1.0 / jnp.sqrt(jnp.asarray(H_LAYER, dtype))
    w1 = jax.random.uniform(k1, (BOTTLENECK, H_LAYER), dtype, -lim1, lim1)
    b1 = jax.random.uniform(k2, (1, H_LAYER), dtype, -lim1, lim1)
    w2 = jax.random.uniform(k3, (H_LAYER, x_layer), dtype, -lim2, lim2)
    b2 = jax.random.uniform(k4, (1, x_layer), dtype, -lim2, lim2)
    return w1, b1, w2, b2


if __name__ == "__main__":
    key = jax.random.PRNGKey(0)
    kx, kp = jax.random.split(key)

    B = 16         # small example batch (tiles auto-clamp)
    X_LAYER = 400  # decoder output width (number of items)

    x = jax.random.normal(kx, (B, BOTTLENECK), jnp.float32)
    w1, b1, w2, b2 = init_decoder_params(kp, X_LAYER)

    # Pad/cast weights once (hoisted out of the per-forward path).
    params = prepare_decoder_params(w1, b1, w2, b2)

    out = decoder_forward(x, params, n_items=X_LAYER)
    out = jax.block_until_ready(out)

    # Reference with matching bf16 matmul inputs / f32 accumulation
    # (same semantics as the PyTorch forward, modulo the bf16 MXU inputs).
    xb = x.astype(jnp.bfloat16)
    w1b = w1.astype(jnp.bfloat16)
    w2b = w2.astype(jnp.bfloat16)
    h_ref = jnp.tanh(jnp.dot(xb, w1b, preferred_element_type=jnp.float32) + b1)
    ref = jnp.dot(h_ref.astype(jnp.bfloat16), w2b,
                  preferred_element_type=jnp.float32) + b2

    assert out.shape == (B, X_LAYER)
    assert jnp.allclose(out, ref, atol=5e-3, rtol=5e-3), "mismatch vs reference"

    print("KERNEL_OK")
</pallas_src>

<mosaic_0001>
module attributes {stable_mosaic.version = 11 : i64} {
  func.func @_layer1_kernel(%arg0: i32, %arg1: memref<16x384xbf16, #tpu.memory_space<vmem>>, %arg2: memref<384x640xbf16, #tpu.memory_space<vmem>>, %arg3: memref<1x640xf32, #tpu.memory_space<vmem>>, %arg4: memref<16x640xbf16, #tpu.memory_space<vmem>>) attributes {dimension_semantics = [#tpu.dimension_semantics<parallel>], iteration_bounds = array<i64: 1>, scalar_prefetch = 0 : i64, scratch_operands = 0 : i64, tpu.core_type = #tpu.core_type<tc>, window_params = [{transform_indices = @transform_0, window_bounds = array<i64: 16, 384>}, {pipeline_mode = #tpu.pipeline_mode<synchronous>, transform_indices = @transform_1, window_bounds = array<i64: 384, 640>}, {pipeline_mode = #tpu.pipeline_mode<synchronous>, transform_indices = @transform_2, window_bounds = array<i64: 1, 640>}, {transform_indices = @transform_3, window_bounds = array<i64: 16, 640>}]} {
    %c0 = arith.constant 0 : index
    %c0_0 = arith.constant 0 : index
    %0 = vector.load %arg1[%c0, %c0_0] : memref<16x384xbf16, #tpu.memory_space<vmem>>, vector<16x384xbf16>
    %c0_1 = arith.constant 0 : index
    %c0_2 = arith.constant 0 : index
    %1 = vector.load %arg2[%c0_1, %c0_2] : memref<384x640xbf16, #tpu.memory_space<vmem>>, vector<384x640xbf16>
    %cst = arith.constant dense<0.000000e+00> : vector<16x640xf32>
    %2 = tpu.matmul %0, %1, %cst {dimension_numbers = #tpu.dot_dimension_numbers<[1], [0], [0], [1], [0, 0, 1, 1], [], []>} : vector<16x384xbf16>, vector<384x640xbf16>, vector<16x640xf32> -> vector<16x640xf32>
    %c0_3 = arith.constant 0 : index
    %c0_4 = arith.constant 0 : index
    %3 = vector.load %arg3[%c0_3, %c0_4] : memref<1x640xf32, #tpu.memory_space<vmem>>, vector<1x640xf32>
    %4 = vector.broadcast %3 : vector<1x640xf32> to vector<16x640xf32>
    %5 = arith.addf %2, %4 : vector<16x640xf32>
    %6 = math.tanh %5 : vector<16x640xf32>
    %7 = arith.truncf %6 : vector<16x640xf32> to vector<16x640xbf16>
    %c0_5 = arith.constant 0 : index
    %c0_6 = arith.constant 0 : index
    %8 = vector.load %arg4[%c0_5, %c0_6] : memref<16x640xbf16, #tpu.memory_space<vmem>>, vector<16x640xbf16>
    tpu.vector_store %arg4[%c0_5, %c0_6], %7 {strides = array<i32>} : memref<16x640xbf16, #tpu.memory_space<vmem>>, vector<16x640xbf16>,
    return
  }
  func.func @transform_0(%arg0: i32) -> (i32, i32) {
    %c0_i32 = arith.constant 0 : i32
    %c0_i32_0 = arith.constant 0 : i32
    return %arg0, %c0_i32 : i32, i32
  }
  func.func @transform_1(%arg0: i32) -> (i32, i32) {
    %c0_i32 = arith.constant 0 : i32
    %c0_i32_0 = arith.constant 0 : i32
    %c0_i32_1 = arith.constant 0 : i32
    return %c0_i32, %c0_i32_0 : i32, i32
  }
  func.func @transform_2(%arg0: i32) -> (i32, i32) {
    %c0_i32 = arith.constant 0 : i32
    %c0_i32_0 = arith.constant 0 : i32
    %c0_i32_1 = arith.constant 0 : i32
    return %c0_i32, %c0_i32_0 : i32, i32
  }
  func.func @transform_3(%arg0: i32) -> (i32, i32) {
    %c0_i32 = arith.constant 0 : i32
    %c0_i32_0 = arith.constant 0 : i32
    return %arg0, %c0_i32 : i32, i32
  }
}

module attributes {stable_mosaic.version = 11 : i64} {
  func.func @_layer2_kernel(%arg0: i32, %arg1: i32, %arg2: memref<16x640xbf16, #tpu.memory_space<vmem>>, %arg3: memref<640x512xbf16, #tpu.memory_space<vmem>>, %arg4: memref<1x512xf32, #tpu.memory_space<vmem>>, %arg5: memref<16x512xf32, #tpu.memory_space<vmem>>) attributes {dimension_semantics = [#tpu.dimension_semantics<parallel>, #tpu.dimension_semantics<parallel>], iteration_bounds = array<i64: 1, 1>, scalar_prefetch = 0 : i64, scratch_operands = 0 : i64, tpu.core_type = #tpu.core_type<tc>, window_params = [{transform_indices = @transform_0, window_bounds = array<i64: 16, 640>}, {transform_indices = @transform_1, window_bounds = array<i64: 640, 512>}, {transform_indices = @transform_2, window_bounds = array<i64: 1, 512>}, {transform_indices = @transform_3, window_bounds = array<i64: 16, 512>}]} {
    %c0 = arith.constant 0 : index
    %c0_0 = arith.constant 0 : index
    %0 = vector.load %arg2[%c0, %c0_0] : memref<16x640xbf16, #tpu.memory_space<vmem>>, vector<16x640xbf16>
    %c0_1 = arith.constant 0 : index
    %c0_2 = arith.constant 0 : index
    %1 = vector.load %arg3[%c0_1, %c0_2] : memref<640x512xbf16, #tpu.memory_space<vmem>>, vector<640x512xbf16>
    %cst = arith.constant dense<0.000000e+00> : vector<16x512xf32>
    %2 = tpu.matmul %0, %1, %cst {dimension_numbers = #tpu.dot_dimension_numbers<[1], [0], [0], [1], [0, 0, 1, 1], [], []>} : vector<16x640xbf16>, vector<640x512xbf16>, vector<16x512xf32> -> vector<16x512xf32>
    %c0_3 = arith.constant 0 : index
    %c0_4 = arith.constant 0 : index
    %3 = vector.load %arg4[%c0_3, %c0_4] : memref<1x512xf32, #tpu.memory_space<vmem>>, vector<1x512xf32>
    %4 = vector.broadcast %3 : vector<1x512xf32> to vector<16x512xf32>
    %5 = arith.addf %2, %4 : vector<16x512xf32>
    %c0_5 = arith.constant 0 : index
    %c0_6 = arith.constant 0 : index
    %6 = vector.load %arg5[%c0_5, %c0_6] : memref<16x512xf32, #tpu.memory_space<vmem>>, vector<16x512xf32>
    tpu.vector_store %arg5[%c0_5, %c0_6], %5 {strides = array<i32>} : memref<16x512xf32, #tpu.memory_space<vmem>>, vector<16x512xf32>,
    return
  }
  func.func @transform_0(%arg0: i32, %arg1: i32) -> (i32, i32) {
    %c0_i32 = arith.constant 0 : i32
    %c0_i32_0 = arith.constant 0 : i32
    return %arg1, %c0_i32 : i32, i32
  }
  func.func @transform_1(%arg0: i32, %arg1: i32) -> (i32, i32) {
    %c0_i32 = arith.constant 0 : i32
    %c0_i32_0 = arith.constant 0 : i32
    return %c0_i32, %arg0 : i32, i32
  }
  func.func @transform_2(%arg0: i32, %arg1: i32) -> (i32, i32) {
    %c0_i32 = arith.constant 0 : i32
    %c0_i32_0 = arith.constant 0 : i32
    return %c0_i32, %arg0 : i32, i32
  }
  func.func @transform_3(%arg0: i32, %arg1: i32) -> (i32, i32) {
    %c0_i32 = arith.constant 0 : i32
    return %arg1, %arg0 : i32, i32
  }
}

</mosaic_0001>

<bundles_post_ra>
// kernel: decoder_forward.2
= control target key start
LH: loop header
LB: loop body
LE: loop exit
PB: predicated region body
PF: predicated region fallthrough
CT: control target
= control target key end

     0   :  { %8 = vsyncpa [#allocation3], 0  ;;  %s1575_s12 = smov [#allocation2]   ;;  %s1658_s0 = inlined_call_operand.vmem [shape: bf16[16,384], index: 0, kind: input, shape index: {}]   ;;  %s1659_s1 = inlined_call_operand.hbm [shape: bf16[384,640], index: 1, kind: input, shape index: {}]   ;;  %s1660_s2 = inlined_call_operand.vmem [shape: f32[1,640], index: 2, kind: input, shape index: {}]   ;;  %s1661_s3 = inlined_call_operand.vmem [shape: bf16[16,640], index: 3, kind: output, shape index: {}]  }
   0x1   :  { %s16_s13 = sshll.u32 %s1575_s12, 4  ;;  %s1551_s16 = scalar_lea.hbm %s1659_s1, 15360  ;;  %s17_s13 = int_to_ptr.vmem [resolvable:$true] %s16_s13 }
   0x2   :  { %p1552_p0 = scmp.ne.s32.totalorder %s1659_s1, %s1551_s16  ;;  %p1555_p1 = scmp.lt.u32.totalorder %s1551_s16, %s1659_s1 }
   0x4   :  { %p1557_p2 = pnand %p1555_p1, %p1552_p0 }
   0x6   :  { %1560 = shalt.err (!%p1557_p2)
}
   0x7   :  { %s1561_s21 = scalar_lea.vmem %s17_s13, 15360  ;;  %p1566_p4 = scmp.lt.s32.totalorder %s17_s13, %s17_s13 }
   0x8   :  { %p1562_p3 = scmp.ne.s32.totalorder %s17_s13, %s1561_s21  ;;  %p1567_p5 = scmp.lt.s32.totalorder %s1561_s21, %s1561_s21 }
   0xa   :  { %p1568_p6 = por %p1567_p5, %p1566_p4 }
   0xc   :  { %p1569_p7 = pnand %p1568_p6, %p1562_p3 }
   0xe   :  { %1572 = shalt.err (!%p1569_p7)
}
   0xf   :  { %s1576_s22 = smov 320   ;;  %s1577_s23 = smov 20  }
  0x10   :  { %22 = dma.hbm_to_vmem [thread:$0]  %s1659_s1, 15360, %s17_s13, [#allocation3], %s1576_s22, %s1576_s22, %s1577_s23  }
  0x11   :  { %1573 = dma.done.wait [#allocation3], 15360  }
  0x12   :  { %1574 = vsyncadd [#allocation3], 4294951936  ;;  %v1359_v0 = vld [vmem:[#allocation2 + $0x4] ss:$20 sps:$4 sm:$0xff]   ;;  %v1361_v1 = vld [vmem:[#allocation2 + $0xc] ss:$20 sps:$4 sm:$0xff]  }
  0x13   :  { %844 = vmatprep.subr.bf16.mxu0 %v1359_v0  ;;  %v1363_v2 = vld [vmem:[#allocation2] ss:$20 sps:$4 sm:$0xff]   ;;  %v1364_v3 = vld [vmem:[#allocation2 + $0x8] ss:$20 sps:$4 sm:$0xff]   ;;  %930 = vmatprep.subr.bf16.mxu1 %v1361_v1  ;;  %v1370_v7 = vld [vmem:[#allocation2 + $0x30] ss:$20 sps:$4 sm:$0xff]  }
  0x14   :  { %v1365_v4 = vld [vmem:[#allocation2 + $0x2c] ss:$20 sps:$4 sm:$0xff]   ;;  %845 = vmatpush1.bf16.msra.mxu0 %v1363_v2  ;;  %931 = vmatpush1.bf16.msra.mxu1 %v1364_v3  ;;  %v1367_v5 = vld [vmem:[#allocation2 + $0x34] ss:$20 sps:$4 sm:$0xff]   ;;  %v1373_v9 = vld [vmem:[#allocation2 + $0x5c] ss:$20 sps:$4 sm:$0xff]  }
  0x15   :  { %v1369_v6 = vld [vmem:[#allocation2 + $0x28] ss:$20 sps:$4 sm:$0xff]   ;;  %846 = vmatprep.subr.bf16.mxu0 %v1365_v4  ;;  %932 = vmatprep.subr.bf16.mxu1 %v1367_v5  ;;  %v1375_v10 = vld [vmem:[#allocation2 + $0x50] ss:$20 sps:$4 sm:$0xff]   ;;  %v1376_v11 = vld [vmem:[#allocation2 + $0x58] ss:$20 sps:$4 sm:$0xff]  }
  0x16   :  { %v1371_v8 = vld [vmem:[#allocation2 + $0x54] ss:$20 sps:$4 sm:$0xff]   ;;  %v1377_v12 = vld [vmem:[#allocation2 + $0x7c] ss:$20 sps:$4 sm:$0xff]   ;;  %v1379_v13 = vld [vmem:[#allocation2 + $0x84] ss:$20 sps:$4 sm:$0xff]  }
  0x17   :  { %v1381_v14 = vld [vmem:[#allocation2 + $0x78] ss:$20 sps:$4 sm:$0xff]   ;;  %v1382_v15 = vld [vmem:[#allocation2 + $0x80] ss:$20 sps:$4 sm:$0xff]   ;;  %v1388_v19 = vld [vmem:[#allocation2 + $0xa8] ss:$20 sps:$4 sm:$0xff]  }
  0x18   :  { %847 = vmatpush1.bf16.msra.mxu0 %v1369_v6  ;;  %933 = vmatpush1.bf16.msra.mxu1 %v1370_v7  ;;  %v1383_v16 = vld [vmem:[#allocation2 + $0xa4] ss:$20 sps:$4 sm:$0xff]   ;;  %v1385_v17 = vld [vmem:[#allocation2 + $0xac] ss:$20 sps:$4 sm:$0xff]   ;;  %v1391_v21 = vld [vmem:[#allocation2 + $0xd4] ss:$20 sps:$4 sm:$0xff]  }
  0x19   :  { %848 = vmatprep.subr.bf16.mxu0 %v1371_v8  ;;  %934 = vmatprep.subr.bf16.mxu1 %v1373_v9  ;;  %v1387_v18 = vld [vmem:[#allocation2 + $0xa0] ss:$20 sps:$4 sm:$0xff]   ;;  %v1393_v22 = vld [vmem:[#allocation2 + $0xc8] ss:$20 sps:$4 sm:$0xff]   ;;  %v1394_v23 = vld [vmem:[#allocation2 + $0xd0] ss:$20 sps:$4 sm:$0xff]  }
  0x1a   :  { %v1389_v20 = vld [vmem:[#allocation2 + $0xcc] ss:$20 sps:$4 sm:$0xff]   ;;  %v1395_v24 = vld [vmem:[#allocation2 + $0xf4] ss:$20 sps:$4 sm:$0xff]   ;;  %v1397_v25 = vld [vmem:[#allocation2 + $0xfc] ss:$20 sps:$4 sm:$0xff]  }
  0x1b   :  { %v1399_v26 = vld [vmem:[#allocation2 + $0xf0] ss:$20 sps:$4 sm:$0xff]   ;;  %v1400_v27 = vld [vmem:[#allocation2 + $0xf8] ss:$20 sps:$4 sm:$0xff]   ;;  %v1406_v31 = vld [vmem:[#allocation2 + $0x120] ss:$20 sps:$4 sm:$0xff]  }
  0x1c   :  { %849 = vmatpush1.bf16.msra.mxu0 %v1375_v10  ;;  %935 = vmatpush1.bf16.msra.mxu1 %v1376_v11  ;;  %v1401_v28 = vld [vmem:[#allocation2 + $0x11c] ss:$20 sps:$4 sm:$0xff]   ;;  %v1403_v29 = vld [vmem:[#allocation2 + $0x124] ss:$20 sps:$4 sm:$0xff]   ;;  %v1409_v33 = vld [vmem:[#allocation2 + $0x14c] ss:$20 sps:$4 sm:$0xff]  }
  0x1d   :  { %850 = vmatprep.subr.bf16.mxu0 %v1377_v12  ;;  %936 = vmatprep.subr.bf16.mxu1 %v1379_v13  ;;  %v1405_v30 = vld [vmem:[#allocation2 + $0x118] ss:$20 sps:$4 sm:$0xff]   ;;  %v1411_v34 = vld [vmem:[#allocation2 + $0x140] ss:$20 sps:$4 sm:$0xff]   ;;  %v1412_v35 = vld [vmem:[#allocation2 + $0x148] ss:$20 sps:$4 sm:$0xff]  }
  0x1e   :  { %v1407_v32 = vld [vmem:[#allocation2 + $0x144] ss:$20 sps:$4 sm:$0xff]   ;;  %v1413_v36 = vld [vmem:[#allocation2 + $0x16c] ss:$20 sps:$4 sm:$0xff]   ;;  %v1415_v37 = vld [vmem:[#allocation2 + $0x174] ss:$20 sps:$4 sm:$0xff]  }
  0x1f   :  { %v1417_v38 = vld [vmem:[#allocation2 + $0x168] ss:$20 sps:$4 sm:$0xff]   ;;  %v1418_v39 = vld [vmem:[#allocation2 + $0x170] ss:$20 sps:$4 sm:$0xff]   ;;  %v1424_v43 = vld [vmem:[#allocation2 + $0x198] ss:$20 sps:$4 sm:$0xff]  }
  0x20   :  { %851 = vmatpush1.bf16.msra.mxu0 %v1381_v14  ;;  %937 = vmatpush1.bf16.msra.mxu1 %v1382_v15  ;;  %v1419_v40 = vld [vmem:[#allocation2 + $0x194] ss:$20 sps:$4 sm:$0xff]   ;;  %v1421_v41 = vld [vmem:[#allocation2 + $0x19c] ss:$20 sps:$4 sm:$0xff]   ;;  %v1427_v45 = vld [vmem:[#allocation2 + $0x1c4] ss:$20 sps:$4 sm:$0xff]  }
  0x21   :  { %852 = vmatprep.subr.bf16.mxu0 %v1383_v16  ;;  %938 = vmatprep.subr.bf16.mxu1 %v1385_v17  ;;  %v1423_v42 = vld [vmem:[#allocation2 + $0x190] ss:$20 sps:$4 sm:$0xff]   ;;  %v1429_v46 = vld [vmem:[#allocation2 + $0x1b8] ss:$20 sps:$4 sm:$0xff]   ;;  %v1430_v48 = vld [vmem:[#allocation2 + $0x1c0] ss:$20 sps:$4 sm:$0xff]  }
  0x22   :  { %v1425_v44 = vld [vmem:[#allocation2 + $0x1bc] ss:$20 sps:$4 sm:$0xff]   ;;  %v1431_v49 = vld [vmem:[#allocation2 + $0x1e4] ss:$20 sps:$4 sm:$0xff]   ;;  %v1433_v50 = vld [vmem:[#allocation2 + $0x1ec] ss:$20 sps:$4 sm:$0xff]  }
  0x23   :  { %v1616_v47 = vld [vmem:[%s1658_s0 + $0x4] ss:$12 sps:$4 sm:$0xff]   ;;  %v1435_v51 = vld [vmem:[#allocation2 + $0x1e0] ss:$20 sps:$4 sm:$0xff]   ;;  %v1436_v52 = vld [vmem:[#allocation2 + $0x1e8] ss:$20 sps:$4 sm:$0xff]  }
  0x24   :  { %853 = vmatpush1.bf16.msra.mxu0 %v1387_v18  ;;  %939 = vmatpush1.bf16.msra.mxu1 %v1388_v19  ;;  %v1437_v53 = vld [vmem:[#allocation2 + $0x20c] ss:$20 sps:$4 sm:$0xff]   ;;  %v1439_v54 = vld [vmem:[#allocation2 + $0x214] ss:$20 sps:$4 sm:$0xff]   ;;  %v1442_v56 = vld [vmem:[#allocation2 + $0x210] ss:$20 sps:$4 sm:$0xff]  }
  0x25   :  { %854 = vmatprep.subr.bf16.mxu0 %v1389_v20  ;;  %940 = vmatprep.subr.bf16.mxu1 %v1391_v21  ;;  %v1441_v55 = vld [vmem:[#allocation2 + $0x208] ss:$20 sps:$4 sm:$0xff]   ;;  %v1447_v59 = vld [vmem:[#allocation2 + $0x230] ss:$20 sps:$4 sm:$0xff]   ;;  %v1448_v60 = vld [vmem:[#allocation2 + $0x238] ss:$20 sps:$4 sm:$0xff]  }
  0x26   :  { %876 = vmatprep.mubr.bf16.mxu0 %v1616_v47  ;;  %962 = vmatprep.mubr.bf16.mxu1 %v1616_v47  ;;  %v1443_v57 = vld [vmem:[#allocation2 + $0x234] ss:$20 sps:$4 sm:$0xff]   ;;  %v1445_v58 = vld [vmem:[#allocation2 + $0x23c] ss:$20 sps:$4 sm:$0xff]   ;;  %v1451_v62 = vld [vmem:[#allocation2 + $0x264] ss:$20 sps:$4 sm:$0xff]  }
  0x27   :  { %v1449_v61 = vld [vmem:[#allocation2 + $0x25c] ss:$20 sps:$4 sm:$0xff]   ;;  %v1453_v63 = vld [vmem:[#allocation2 + $0x258] ss:$20 sps:$4 sm:$0xff]   ;;  %v1454_v0 = vld [vmem:[#allocation2 + $0x260] ss:$20 sps:$4 sm:$0xff]  }
  0x28   :  { %855 = vmatpush1.bf16.msra.mxu0 %v1393_v22  ;;  %941 = vmatpush1.bf16.msra.mxu1 %v1394_v23  ;;  %v1459_v1 = vld [vmem:[#allocation2 + $0x284] ss:$20 sps:$4 sm:$0xff]   ;;  %v1462_v2 = vld [vmem:[#allocation2 + $0x28c] ss:$20 sps:$4 sm:$0xff]   ;;  %v1460_v4 = vld [vmem:[#allocation2 + $0x288] ss:$20 sps:$4 sm:$0xff]  }
  0x29   :  { %856 = vmatprep.subr.bf16.mxu0 %v1395_v24  ;;  %942 = vmatprep.subr.bf16.mxu1 %v1397_v25  ;;  %v1457_v3 = vld [vmem:[#allocation2 + $0x280] ss:$20 sps:$4 sm:$0xff]   ;;  %v1464_v8 = vld [vmem:[#allocation2 + $0x2a8] ss:$20 sps:$4 sm:$0xff]   ;;  %v1467_v9 = vld [vmem:[#allocation2 + $0x2b0] ss:$20 sps:$4 sm:$0xff]  }
  0x2a   :  { %v1623_v5 = vld [vmem:[%s1658_s0] ss:$12 sps:$4 sm:$0xff]   ;;  %v1469_v7 = vld [vmem:[#allocation2 + $0x2b4] ss:$20 sps:$4 sm:$0xff]   ;;  %v1475_v11 = vld [vmem:[#allocation2 + $0x2dc] ss:$20 sps:$4 sm:$0xff]  }
  0x2b   :  { %v1466_v6 = vld [vmem:[#allocation2 + $0x2ac] ss:$20 sps:$4 sm:$0xff]   ;;  %v1472_v10 = vld [vmem:[#allocation2 + $0x2d4] ss:$20 sps:$4 sm:$0xff]   ;;  %v1470_v12 = vld [vmem:[#allocation2 + $0x2d0] ss:$20 sps:$4 sm:$0xff]  }
  0x2c   :  { %857 = vmatpush1.bf16.msra.mxu0 %v1399_v26  ;;  %943 = vmatpush1.bf16.msra.mxu1 %v1400_v27  ;;  %v1578_v13 = vmov 0   ;;  %v1473_v14 = vld [vmem:[#allocation2 + $0x2d8] ss:$20 sps:$4 sm:$0xff]   ;;  %v1478_v15 = vld [vmem:[#allocation2 + $0x2fc] ss:$20 sps:$4 sm:$0xff]   ;;  %vm1580_vm0 = vmmov 0  }
  0x2d   :  { %858 = vmatprep.subr.bf16.mxu0 %v1401_v28  ;;  %944 = vmatprep.subr.bf16.mxu1 %v1403_v29  ;;  %v1481_v16 = vld [vmem:[#allocation2 + $0x304] ss:$20 sps:$4 sm:$0xff]   ;;  %v1479_v18 = vld [vmem:[#allocation2 + $0x300] ss:$20 sps:$4 sm:$0xff]   ;;  %v1485_v22 = vld [vmem:[#allocation2 + $0x328] ss:$20 sps:$4 sm:$0xff]  }
  0x2e   :  { %v1476_v17 = vld [vmem:[#allocation2 + $0x2f8] ss:$20 sps:$4 sm:$0xff]   ;;  %v1482_v21 = vld [vmem:[#allocation2 + $0x320] ss:$20 sps:$4 sm:$0xff]   ;;  %v1488_v25 = vld [vmem:[#allocation2 + $0x348] ss:$20 sps:$4 sm:$0xff]  }
  0x2f   :  { %v1484_v19 = vld [vmem:[#allocation2 + $0x324] ss:$20 sps:$4 sm:$0xff]   ;;  %v1487_v20 = vld [vmem:[#allocation2 + $0x32c] ss:$20 sps:$4 sm:$0xff]   ;;  %v1493_v24 = vld [vmem:[#allocation2 + $0x354] ss:$20 sps:$4 sm:$0xff]  }
  0x30   :  { %859 = vmatpush1.bf16.msra.mxu0 %v1405_v30  ;;  %945 = vmatpush1.bf16.msra.mxu1 %v1406_v31  ;;  %v1490_v23 = vld [vmem:[#allocation2 + $0x34c] ss:$20 sps:$4 sm:$0xff]   ;;  %v1491_v26 = vld [vmem:[#allocation2 + $0x350] ss:$20 sps:$4 sm:$0xff]   ;;  %v1496_v27 = vld [vmem:[#allocation2 + $0x374] ss:$20 sps:$4 sm:$0xff]  }
  0x31   :  { %860 = vmatprep.subr.bf16.mxu0 %v1407_v32  ;;  %946 = vmatprep.subr.bf16.mxu1 %v1409_v33  ;;  %v1499_v28 = vld [vmem:[#allocation2 + $0x37c] ss:$20 sps:$4 sm:$0xff]   ;;  %v1497_v30 = vld [vmem:[#allocation2 + $0x378] ss:$20 sps:$4 sm:$0xff]  }
  0x32   :  { %v1494_v29 = vld [vmem:[#allocation2 + $0x370] ss:$20 sps:$4 sm:$0xff]   ;;  %v1500_v33 = vld [vmem:[#allocation2 + $0x398] ss:$20 sps:$4 sm:$0xff]  }
  0x33   :  { %v1502_v31 = vld [vmem:[#allocation2 + $0x39c] ss:$20 sps:$4 sm:$0xff]   ;;  %v1505_v32 = vld [vmem:[#allocation2 + $0x3a4] ss:$20 sps:$4 sm:$0xff]  }
  0x34   :  { %861 = vmatpush1.bf16.msra.mxu0 %v1411_v34  ;;  %947 = vmatpush1.bf16.msra.mxu1 %v1412_v35  ;;  %v1503_v34 = vld [vmem:[#allocation2 + $0x3a0] ss:$20 sps:$4 sm:$0xff]   ;;  %v1507_v35 = vld [vmem:[#allocation2 + $0x150] ss:$20 sps:$4 sm:$0xff]  }
  0x35   :  { %862 = vmatprep.subr.bf16.mxu0 %v1413_v36  ;;  %948 = vmatprep.subr.bf16.mxu1 %v1415_v37  ;;  %v1630_v36 = vld [vmem:[%s1658_s0 + $0x8] ss:$12 sps:$4 sm:$0xff]   ;;  %v1508_v37 = vld [vmem:[#allocation2 + $0x10] ss:$20 sps:$4 sm:$0xff]  }
  0x38   :  { %863 = vmatpush1.bf16.msra.mxu0 %v1417_v38  ;;  %949 = vmatpush1.bf16.msra.mxu1 %v1418_v39  ;;  %v1509_v38 = vld [vmem:[#allocation2 + $0x290] ss:$20 sps:$4 sm:$0xff]   ;;  %v1579_v39 = vmov 0.0  }
  0x39   :  { %864 = vmatprep.subr.bf16.mxu0 %v1419_v40  ;;  %950 = vmatprep.subr.bf16.mxu1 %v1421_v41  ;;  %v1510_v40 = vld [vmem:[#allocation2 + $0x178] ss:$20 sps:$4 sm:$0xff]  }
  0x3a   :  { %v1511_v41 = vld [vmem:[#allocation2 + $0x38] ss:$20 sps:$4 sm:$0xff]  }
  0x3c   :  { %865 = vmatpush1.bf16.msra.mxu0 %v1423_v42  ;;  %951 = vmatpush1.bf16.msra.mxu1 %v1424_v43  ;;  %v1512_v42 = vld [vmem:[#allocation2 + $0x2b8] ss:$20 sps:$4 sm:$0xff]   ;;  %v1513_v43 = vld [vmem:[#allocation2 + $0x1a0] ss:$20 sps:$4 sm:$0xff]  }
  0x3d   :  { %866 = vmatprep.subr.bf16.mxu0 %v1425_v44  ;;  %952 = vmatprep.subr.bf16.mxu1 %v1427_v45  ;;  %v1514_v44 = vld [vmem:[#allocation2 + $0x60] ss:$20 sps:$4 sm:$0xff]  }
  0x3e   :  { %v1515_v45 = vld [vmem:[#allocation2 + $0x2e0] ss:$20 sps:$4 sm:$0xff]  }
  0x40   :  { %867 = vmatpush1.bf16.msra.mxu0 %v1429_v46  ;;  %953 = vmatpush1.bf16.msra.mxu1 %v1430_v48  ;;  %v1516_v46 = vld [vmem:[#allocation2 + $0x1c8] ss:$20 sps:$4 sm:$0xff]  }
  0x41   :  { %868 = vmatprep.subr.bf16.mxu0 %v1431_v49  ;;  %954 = vmatprep.subr.bf16.mxu1 %v1433_v50  ;;  %v1517_v48 = vld [vmem:[#allocation2 + $0x88] ss:$20 sps:$4 sm:$0xff]   ;;  %v1519_v50 = vld [vmem:[#allocation2 + $0x1f0] ss:$20 sps:$4 sm:$0xff]  }
  0x42   :  { %v1518_v49 = vld [vmem:[#allocation2 + $0x308] ss:$20 sps:$4 sm:$0xff]  }
  0x44   :  { %869 = vmatpush1.bf16.msra.mxu0 %v1435_v51  ;;  %955 = vmatpush1.bf16.msra.mxu1 %v1436_v52  ;;  %v1520_v51 = vld [vmem:[#allocation2 + $0xb0] ss:$20 sps:$4 sm:$0xff]   ;;  %v1522_v52 = vld [vmem:[#allocation2 + $0x218] ss:$20 sps:$4 sm:$0xff]  }
  0x45   :  { %870 = vmatprep.subr.bf16.mxu0 %v1437_v53  ;;  %956 = vmatprep.subr.bf16.mxu1 %v1439_v54  ;;  %v1523_v53 = vld [vmem:[#allocation2 + $0xd8] ss:$20 sps:$4 sm:$0xff]  }
  0x46   :  { %v1524_v54 = vld [vmem:[#allocation2 + $0x358] ss:$20 sps:$4 sm:$0xff]  }
  0x48   :  { %871 = vmatpush1.bf16.msra.mxu0 %v1441_v55  ;;  %957 = vmatpush1.bf16.msra.mxu1 %v1442_v56  ;;  %v1525_v55 = vld [vmem:[#allocation2 + $0x240] ss:$20 sps:$4 sm:$0xff]  }
  0x49   :  { %872 = vmatprep.subr.bf16.mxu0 %v1443_v57  ;;  %958 = vmatprep.subr.bf16.mxu1 %v1445_v58  ;;  %v1526_v56 = vld [vmem:[#allocation2 + $0x100] ss:$20 sps:$4 sm:$0xff]   ;;  %v1528_v58 = vld [vmem:[#allocation2 + $0x268] ss:$20 sps:$4 sm:$0xff]  }
  0x4a   :  { %v1527_v57 = vld [vmem:[#allocation2 + $0x380] ss:$20 sps:$4 sm:$0xff]  }
  0x4c   :  { %873 = vmatpush1.bf16.msra.mxu0 %v1447_v59  ;;  %959 = vmatpush1.bf16.msra.mxu1 %v1448_v60  ;;  %v1529_v59 = vld [vmem:[#allocation2 + $0x128] ss:$20 sps:$4 sm:$0xff]  }
  0x4d   :  { %874 = vmatprep.subr.bf16.mxu0 %v1449_v61  ;;  %960 = vmatprep.subr.bf16.mxu1 %v1451_v62  ;;  %v1530_v60 = vld [vmem:[#allocation2 + $0x3a8] ss:$20 sps:$4 sm:$0xff]   ;;  %v179_v61 = vlaneseq }
  0x4f   :  { %v180_v62 = vshrl.u32 %v179_v61, 7 }
  0x50   :  { %875 = vmatpush1.bf16.msra.mxu0 %v1453_v63  ;;  %961 = vmatpush1.bf16.msra.mxu1 %v1454_v0 }
  0x51   :  { %887 = vmatprep.subr.bf16.mxu0 %v1459_v1  ;;  %973 = vmatprep.subr.bf16.mxu1 %v1462_v2  ;;  %v181_v63 = vsub.s32 0, %v180_v62  ;;  %v189_v0 = vsub.s32 2, %v180_v62  ;;  %v177_v1 = vld [vmem:[%s1660_s2] sm:$0x1f]  ;;  %v185_v2 = vsub.s32 1, %v180_v62 }
  0x53   :  { %877 = vmatmul.mubr.bf16.vlgmr.msra.gmra.mrb[0].mxu0 %v1623_v5  ;;  %963 = vmatmul.mubr.bf16.vlgmr.msra.gmra.mrb[0].mxu1 %v1623_v5 }
  0x54   :  { %888 = vmatpush1.bf16.msra.mxu0 %v1457_v3  ;;  %974 = vmatpush1.bf16.msra.mxu1 %v1460_v4  ;;  %v193_v3 = vsub.s32 3, %v180_v62  ;;  %v182_v4 = vrot.slane %v177_v1, %v181_v63 }
  0x55   :  { %889 = vmatprep.subr.bf16.mxu0 %v1466_v6  ;;  %975 = vmatprep.subr.bf16.mxu1 %v1469_v7  ;;  %v190_v6 = vrot.slane %v177_v1, %v189_v0  ;;  %v186_v7 = vrot.slane %v177_v1, %v185_v2 }
  0x56   :  { %919 = vmatprep.mubr.bf16.mxu0 %v1578_v13  ;;  %1005 = vmatprep.mubr.bf16.mxu1 %v1578_v13 }
  0x58   :  { %890 = vmatpush1.bf16.msra.mxu0 %v1464_v8  ;;  %976 = vmatpush1.bf16.msra.mxu1 %v1467_v9  ;;  %v194_v8 = vrot.slane %v177_v1, %v193_v3 }
  0x59   :  { %891 = vmatprep.subr.bf16.mxu0 %v1472_v10  ;;  %977 = vmatprep.subr.bf16.mxu1 %v1475_v11 }
  0x5c   :  { %892 = vmatpush1.bf16.msra.mxu0 %v1470_v12  ;;  %978 = vmatpush1.bf16.msra.mxu1 %v1473_v14 }
  0x5d   :  { %893 = vmatprep.subr.bf16.mxu0 %v1478_v15  ;;  %979 = vmatprep.subr.bf16.mxu1 %v1481_v16 }
  0x60   :  { %894 = vmatpush1.bf16.msra.mxu0 %v1476_v17  ;;  %980 = vmatpush1.bf16.msra.mxu1 %v1479_v18 }
  0x61   :  { %895 = vmatprep.subr.bf16.mxu0 %v1484_v19  ;;  %981 = vmatprep.subr.bf16.mxu1 %v1487_v20 }
  0x64   :  { %896 = vmatpush1.bf16.msra.mxu0 %v1482_v21  ;;  %982 = vmatpush1.bf16.msra.mxu1 %v1485_v22 }
  0x65   :  { %897 = vmatprep.subr.bf16.mxu0 %v1490_v23  ;;  %983 = vmatprep.subr.bf16.mxu1 %v1493_v24 }
  0x68   :  { %898 = vmatpush1.bf16.msra.mxu0 %v1488_v25  ;;  %984 = vmatpush1.bf16.msra.mxu1 %v1491_v26 }
  0x69   :  { %899 = vmatprep.subr.bf16.mxu0 %v1496_v27  ;;  %985 = vmatprep.subr.bf16.mxu1 %v1499_v28 }
  0x6c   :  { %900 = vmatpush1.bf16.msra.mxu0 %v1494_v29  ;;  %986 = vmatpush1.bf16.msra.mxu1 %v1497_v30 }
  0x6d   :  { %901 = vmatprep.subr.bf16.mxu0 %v1502_v31  ;;  %987 = vmatprep.subr.bf16.mxu1 %v1505_v32 }
  0x70   :  { %902 = vmatpush1.bf16.msra.mxu0 %v1500_v33  ;;  %988 = vmatpush1.bf16.msra.mxu1 %v1503_v34 }
  0x71   :  { %1286 = vmatprep.subr.bf16.mxu0 %v1507_v35  ;;  %1317 = vmatprep.subr.bf16.mxu1 %v1579_v39 }
  0x73   :  { %920 = vmatmul.mubr.bf16.vlgmr.msra.gmra.mrb[0].mxu0 %v1630_v36  ;;  %1006 = vmatmul.mubr.bf16.vlgmr.msra.gmra.mrb[0].mxu1 %v1630_v36 }
  0x74   :  { %1287 = vmatpush3.bf16.msra.mxu0 %v1508_v37  ;;  %1318 = vmatpush3.bf16.msra.mxu1 %v1509_v38 }
  0x75   :  { %1288 = vmatprep.subr.bf16.mxu0 %v1510_v40  ;;  %1319 = vmatprep.subr.bf16.mxu1 %v1579_v39 }
  0x76   :  { %1048 = vmatprep.mubr.bf16.mxu0 %v1616_v47  ;;  %1333 = vmatprep.mubr.msk.bf16.mxu1 %vm1580_vm0, %v1579_v39  ;;  %v1521_v47 = vld [vmem:[#allocation2 + $0x330] ss:$20 sps:$4 sm:$0xff]  }
  0x78   :  { %1289 = vmatpush3.bf16.msra.mxu0 %v1511_v41  ;;  %1320 = vmatpush3.bf16.msra.mxu1 %v1512_v42 }
  0x79   :  { %1290 = vmatprep.subr.bf16.mxu0 %v1513_v43  ;;  %1321 = vmatprep.subr.bf16.mxu1 %v1579_v39 }
  0x7c   :  { %1291 = vmatpush3.bf16.msra.mxu0 %v1514_v44  ;;  %1322 = vmatpush3.bf16.msra.mxu1 %v1515_v45 }
  0x7d   :  { %1292 = vmatprep.subr.bf16.mxu0 %v1516_v46  ;;  %1323 = vmatprep.subr.bf16.mxu1 %v1579_v39 }
  0x80   :  { %1293 = vmatpush3.bf16.msra.mxu0 %v1517_v48  ;;  %1324 = vmatpush3.bf16.msra.mxu1 %v1518_v49 }
  0x81   :  { %1294 = vmatprep.subr.bf16.mxu0 %v1519_v50  ;;  %1325 = vmatprep.subr.bf16.mxu1 %v1579_v39 }
  0x84   :  { %1295 = vmatpush3.bf16.msra.mxu0 %v1520_v51  ;;  %1326 = vmatpush3.bf16.msra.mxu1 %v1521_v47 }
  0x85   :  { %1296 = vmatprep.subr.bf16.mxu0 %v1522_v52  ;;  %1327 = vmatprep.subr.bf16.mxu1 %v1579_v39 }
  0x88   :  { %1297 = vmatpush3.bf16.msra.mxu0 %v1523_v53  ;;  %1328 = vmatpush3.bf16.msra.mxu1 %v1524_v54 }
  0x89   :  { %1298 = vmatprep.subr.bf16.mxu0 %v1525_v55  ;;  %1329 = vmatprep.subr.bf16.mxu1 %v1579_v39 }
  0x8c   :  { %1299 = vmatpush3.bf16.msra.mxu0 %v1526_v56  ;;  %1330 = vmatpush3.bf16.msra.mxu1 %v1527_v57 }
  0x8d   :  { %1300 = vmatprep.subr.bf16.mxu0 %v1528_v58  ;;  %1331 = vmatprep.subr.bf16.mxu1 %v1579_v39 }
  0x90   :  { %1301 = vmatpush3.bf16.msra.mxu0 %v1529_v59  ;;  %1332 = vmatpush3.bf16.msra.mxu1 %v1530_v60 }
  0x93   :  { %1049 = vmatmul.mubr.bf16.vlgmr.msra.gmra.mrb[4].mxu0 %v1623_v5  ;;  %1334 = vmatmul.mubr.bf16.vlgmr.msra.gmra.mrb[4].mxu1 %v1630_v36  ;;  %v197_v36 = vsub.s32 4, %v180_v62 }
  0x95   :  { %v198_v38 = vrot.slane %v177_v1, %v197_v36 }
 0x146   :  { %v921_v9 = vpop.f32.mrb[0].mxu0  ;;  %v1007_v10 = vpop.f32.mrb[0].mxu1 }
 0x147   :  { %v1337_v11 = vadd.f32 %v921_v9, %v182_v4  ;;  %v1341_v5 = vadd.f32 %v1007_v10, %v190_v6  ;;  %v923_v12 = vpop.f32.mrb[1].mxu0  ;;  %v1009_v13 = vpop.f32.mrb[1].mxu1 }
 0x148   :  { %v1338_v14 = vadd.f32 %v923_v12, %v186_v7  ;;  %v1342_v15 = vadd.f32 %v1009_v13, %v194_v8  ;;  %v925_v16 = vpop.f32.mrb[2].mxu0  ;;  %v1011_v17 = vpop.f32.mrb[2].mxu1 }
 0x149   :  { %1531 = vtanh.f32 %v1337_v11  ;;  %v1339_v18 = vadd.f32 %v925_v16, %v182_v4  ;;  %v927_v19 = vpop.f32.mrb[3].mxu0  ;;  %v1013_v20 = vpop.f32.mrb[3].mxu1  ;;  %v1343_v21 = vadd.f32 %v1011_v17, %v190_v6 }
 0x14a   :  { %1533 = vtanh.f32 %v1341_v5  ;;  %v1340_v22 = vadd.f32 %v927_v19, %v186_v7  ;;  %v1344_v23 = vadd.f32 %v1013_v20, %v194_v8 }
 0x14b   :  { %1535 = vtanh.f32 %v1338_v14 }
 0x14c   :  { %1537 = vtanh.f32 %v1342_v15 }
 0x14d   :  { %1539 = vtanh.f32 %v1339_v18 }
 0x14e   :  { %1541 = vtanh.f32 %v1343_v21 }
 0x14f   :  { %1543 = vtanh.f32 %v1340_v22 }
 0x150   :  { %1545 = vtanh.f32 %v1344_v23 }
 0x153   :  { %v1532_v24 = vpop.eup %1531 }
 0x154   :  { %v1534_v25 = vpop.eup %1533 }
 0x155   :  { %v1536_v26 = vpop.eup %1535 }
 0x156   :  { %v1538_v27 = vpop.eup %1537  ;;  %v1280_v28 = vpack.c.bf16 %v1536_v26, %v1532_v24 }
 0x157   :  { %v1540_v29 = vpop.eup %1539  ;;  %v1281_v30 = vpack.c.bf16 %v1538_v27, %v1534_v25 }
 0x158   :  { %v1542_v31 = vpop.eup %1541  ;;  %1140 = vst [vmem:[%s1661_s3] sm:$0xff] %v1280_v28 }
 0x159   :  { %v1544_v32 = vpop.eup %1543  ;;  %1141 = vst [vmem:[%s1661_s3 + $0x8] sm:$0xff] %v1281_v30 }
 0x15a   :  { %v1546_v33 = vpop.eup %1545  ;;  %v1283_v34 = vpack.c.bf16 %v1544_v32, %v1540_v29 }
 0x15b   :  { %v1284_v35 = vpack.c.bf16 %v1546_v33, %v1542_v31 }
 0x15c   :  { %1143 = vst [vmem:[%s1661_s3 + $0x14] sm:$0xff] %v1283_v34 }
 0x15d   :  { %1144 = vst [vmem:[%s1661_s3 + $0x1c] sm:$0xff] %v1284_v35 }
 0x166   :  { %v1302_v37 = vpop.f32.mrb[4].mxu0  ;;  %v1091_v39 = vpop.f32.mrb[4].mxu1 }
 0x167   :  { %v1303_v40 = vpop.f32.mrb[5].mxu0  ;;  %v1335_v41 = vpop.f32.mrb[5].mxu1 }
 0x168   :  { %v1304_v42 = vadd.f32 %v1303_v40, %v1302_v37  ;;  %v1305_v43 = vpop.f32.mrb[6].mxu0  ;;  %v1094_v44 = vpop.f32.mrb[6].mxu1 }
 0x169   :  { %v1306_v45 = vpop.f32.mrb[7].mxu0  ;;  %v1336_v46 = vpop.f32.mrb[7].mxu1 }
 0x16a   :  { %v1051_v48 = vadd.f32 %v1304_v42, %v198_v38  ;;  %v1307_v49 = vadd.f32 %v1306_v45, %v1305_v43 }
 0x16c   :  { %v1092_v50 = vadd.f32 %v1091_v39, %v1051_v48  ;;  %v1054_v51 = vadd.f32 %v1307_v49, %v198_v38 }
 0x16e   :  { %1547 = vtanh.f32 %v1092_v50  ;;  %v1095_v47 = vadd.f32 %v1094_v44, %v1054_v51 }
 0x170   :  { %1549 = vtanh.f32 %v1095_v47 }
 0x178   :  { %v1548_v52 = vpop.eup %1547 }
 0x179   :  { %v1282_v53 = vpack.c.bf16 %v1548_v52, %v1548_v52 }
 0x17a   :  { %v1550_v54 = vpop.eup %1549 }
 0x17b   :  { %1142 = vst [vmem:[%s1661_s3 + $0x10] sm:$0xf] %v1282_v53  ;;  %v1285_v55 = vpack.c.bf16 %v1550_v54, %v1550_v54 }
 0x17d   :  { %1145 = vst [vmem:[%s1661_s3 + $0x24] sm:$0xf] %v1285_v55 }
 0x17e   :  { %1150 = vsyncpa [#allocation3], 1 }

// kernel: decoder_forward.3
= control target key start
LH: loop header
LB: loop body
LE: loop exit
PB: predicated region body
PF: predicated region fallthrough
CT: control target
= control target key end

     0   :  { %8 = vsyncpa [#allocation3], 0  ;;  %s1887_s0 = inlined_call_operand.vmem [shape: bf16[16,640], index: 0, kind: input, shape index: {}]   ;;  %s1888_s1 = inlined_call_operand.hbm [shape: bf16[640,512], index: 1, kind: input, shape index: {}]   ;;  %s1889_s2 = inlined_call_operand.vmem [shape: f32[1,512], index: 2, kind: input, shape index: {}]   ;;  %s1890_s3 = inlined_call_operand.hbm [shape: f32[16,512], index: 3, kind: output, shape index: {}]  }
   0x1   :  { %9 = vsyncpa [#allocation4], 0  ;;  %s1818_s12 = smov [#allocation2]   ;;  %s1770_s16 = scalar_lea.hbm %s1888_s1, 20480 }
   0x2   :  { %s17_s13 = sshll.u32 %s1818_s12, 4  ;;  %p1771_p0 = scmp.ne.s32.totalorder %s1888_s1, %s1770_s16  ;;  %s18_s13 = int_to_ptr.vmem [resolvable:$true] %s17_s13 }
   0x3   :  { %p1774_p1 = scmp.lt.u32.totalorder %s1770_s16, %s1888_s1 }
   0x5   :  { %p1776_p2 = pnand %p1774_p1, %p1771_p0 }
   0x7   :  { %1779 = shalt.err (!%p1776_p2)
}
   0x8   :  { %s1780_s21 = scalar_lea.vmem %s18_s13, 20480  ;;  %p1785_p4 = scmp.lt.s32.totalorder %s18_s13, %s18_s13 }
   0x9   :  { %p1781_p3 = scmp.ne.s32.totalorder %s18_s13, %s1780_s21  ;;  %p1786_p5 = scmp.lt.s32.totalorder %s1780_s21, %s1780_s21 }
   0xb   :  { %p1787_p6 = por %p1786_p5, %p1785_p4 }
   0xd   :  { %p1788_p7 = pnand %p1787_p6, %p1781_p3 }
   0xf   :  { %1791 = shalt.err (!%p1788_p7)
}
  0x10   :  { %s1819_s22 = smov 256   ;;  %s1820_s23 = smov 16  }
  0x11   :  { %23 = dma.hbm_to_vmem [thread:$0]  %s1888_s1, 20480, %s18_s13, [#allocation3], %s1819_s22, %s1819_s22, %s1820_s23  }
  0x12   :  { %1814 = dma.done.wait [#allocation3], 20480  }
  0x13   :  { %1815 = vsyncadd [#allocation3], 4294946816  ;;  %v1523_v0 = vld [vmem:[#allocation2 + $0x4] ss:$16 sps:$4 sm:$0xff]   ;;  %v1525_v1 = vld [vmem:[#allocation2 + $0xc] ss:$16 sps:$4 sm:$0xff]  }
  0x14   :  { %1044 = vmatprep.subr.bf16.mxu0 %v1523_v0  ;;  %v1527_v2 = vld [vmem:[#allocation2] ss:$16 sps:$4 sm:$0xff]   ;;  %v1528_v3 = vld [vmem:[#allocation2 + $0x8] ss:$16 sps:$4 sm:$0xff]   ;;  %1173 = vmatprep.subr.bf16.mxu1 %v1525_v1  ;;  %v1529_v4 = vld [vmem:[#allocation2 + $0x24] ss:$16 sps:$4 sm:$0xff]  }
  0x15   :  { %1045 = vmatpush1.bf16.msra.mxu0 %v1527_v2  ;;  %1174 = vmatpush1.bf16.msra.mxu1 %v1528_v3  ;;  %v1531_v5 = vld [vmem:[#allocation2 + $0x2c] ss:$16 sps:$4 sm:$0xff]   ;;  %v1533_v6 = vld [vmem:[#allocation2 + $0x20] ss:$16 sps:$4 sm:$0xff]   ;;  %v1534_v7 = vld [vmem:[#allocation2 + $0x28] ss:$16 sps:$4 sm:$0xff]  }
  0x16   :  { %1046 = vmatprep.subr.bf16.mxu0 %v1529_v4  ;;  %1175 = vmatprep.subr.bf16.mxu1 %v1531_v5  ;;  %v1535_v8 = vld [vmem:[#allocation2 + $0x44] ss:$16 sps:$4 sm:$0xff]   ;;  %v1537_v9 = vld [vmem:[#allocation2 + $0x4c] ss:$16 sps:$4 sm:$0xff]   ;;  %v1539_v10 = vld [vmem:[#allocation2 + $0x40] ss:$16 sps:$4 sm:$0xff]  }
  0x17   :  { %v1540_v11 = vld [vmem:[#allocation2 + $0x48] ss:$16 sps:$4 sm:$0xff]   ;;  %v1541_v12 = vld [vmem:[#allocation2 + $0x64] ss:$16 sps:$4 sm:$0xff]   ;;  %v1543_v13 = vld [vmem:[#allocation2 + $0x6c] ss:$16 sps:$4 sm:$0xff]  }
  0x18   :  { %v1545_v14 = vld [vmem:[#allocation2 + $0x60] ss:$16 sps:$4 sm:$0xff]   ;;  %v1546_v15 = vld [vmem:[#allocation2 + $0x68] ss:$16 sps:$4 sm:$0xff]   ;;  %v1547_v16 = vld [vmem:[#allocation2 + $0x84] ss:$16 sps:$4 sm:$0xff]  }
  0x19   :  { %1047 = vmatpush1.bf16.msra.mxu0 %v1533_v6  ;;  %1176 = vmatpush1.bf16.msra.mxu1 %v1534_v7  ;;  %v1549_v17 = vld [vmem:[#allocation2 + $0x8c] ss:$16 sps:$4 sm:$0xff]   ;;  %v1551_v18 = vld [vmem:[#allocation2 + $0x80] ss:$16 sps:$4 sm:$0xff]   ;;  %v1552_v19 = vld [vmem:[#allocation2 + $0x88] ss:$16 sps:$4 sm:$0xff]  }
  0x1a   :  { %1048 = vmatprep.subr.bf16.mxu0 %v1535_v8  ;;  %1177 = vmatprep.subr.bf16.mxu1 %v1537_v9  ;;  %v1553_v20 = vld [vmem:[#allocation2 + $0xa4] ss:$16 sps:$4 sm:$0xff]   ;;  %v1555_v21 = vld [vmem:[#allocation2 + $0xac] ss:$16 sps:$4 sm:$0xff]   ;;  %v1557_v22 = vld [vmem:[#allocation2 + $0xa0] ss:$16 sps:$4 sm:$0xff]  }
  0x1b   :  { %v1558_v23 = vld [vmem:[#allocation2 + $0xa8] ss:$16 sps:$4 sm:$0xff]   ;;  %v1559_v24 = vld [vmem:[#allocation2 + $0xc4] ss:$16 sps:$4 sm:$0xff]   ;;  %v1561_v25 = vld [vmem:[#allocation2 + $0xcc] ss:$16 sps:$4 sm:$0xff]  }
  0x1c   :  { %v1563_v26 = vld [vmem:[#allocation2 + $0xc0] ss:$16 sps:$4 sm:$0xff]   ;;  %v1564_v27 = vld [vmem:[#allocation2 + $0xc8] ss:$16 sps:$4 sm:$0xff]   ;;  %v1565_v28 = vld [vmem:[#allocation2 + $0xe4] ss:$16 sps:$4 sm:$0xff]  }
  0x1d   :  { %1049 = vmatpush1.bf16.msra.mxu0 %v1539_v10  ;;  %1178 = vmatpush1.bf16.msra.mxu1 %v1540_v11  ;;  %v1567_v29 = vld [vmem:[#allocation2 + $0xec] ss:$16 sps:$4 sm:$0xff]   ;;  %v1569_v30 = vld [vmem:[#allocation2 + $0xe0] ss:$16 sps:$4 sm:$0xff]   ;;  %v1570_v31 = vld [vmem:[#allocation2 + $0xe8] ss:$16 sps:$4 sm:$0xff]  }
  0x1e   :  { %1050 = vmatprep.subr.bf16.mxu0 %v1541_v12  ;;  %1179 = vmatprep.subr.bf16.mxu1 %v1543_v13  ;;  %v1571_v32 = vld [vmem:[#allocation2 + $0x104] ss:$16 sps:$4 sm:$0xff]   ;;  %v1573_v33 = vld [vmem:[#allocation2 + $0x10c] ss:$16 sps:$4 sm:$0xff]   ;;  %v1575_v34 = vld [vmem:[#allocation2 + $0x100] ss:$16 sps:$4 sm:$0xff]  }
  0x1f   :  { %v1576_v35 = vld [vmem:[#allocation2 + $0x108] ss:$16 sps:$4 sm:$0xff]   ;;  %v1577_v36 = vld [vmem:[#allocation2 + $0x124] ss:$16 sps:$4 sm:$0xff]   ;;  %v1579_v37 = vld [vmem:[#allocation2 + $0x12c] ss:$16 sps:$4 sm:$0xff]  }
  0x20   :  { %v1581_v38 = vld [vmem:[#allocation2 + $0x120] ss:$16 sps:$4 sm:$0xff]   ;;  %v1582_v39 = vld [vmem:[#allocation2 + $0x128] ss:$16 sps:$4 sm:$0xff]   ;;  %v1583_v40 = vld [vmem:[#allocation2 + $0x144] ss:$16 sps:$4 sm:$0xff]  }
  0x21   :  { %1051 = vmatpush1.bf16.msra.mxu0 %v1545_v14  ;;  %1180 = vmatpush1.bf16.msra.mxu1 %v1546_v15  ;;  %v1585_v41 = vld [vmem:[#allocation2 + $0x14c] ss:$16 sps:$4 sm:$0xff]   ;;  %v1587_v42 = vld [vmem:[#allocation2 + $0x140] ss:$16 sps:$4 sm:$0xff]   ;;  %v1588_v43 = vld [vmem:[#allocation2 + $0x148] ss:$16 sps:$4 sm:$0xff]  }
  0x22   :  { %1052 = vmatprep.subr.bf16.mxu0 %v1547_v16  ;;  %1181 = vmatprep.subr.bf16.mxu1 %v1549_v17  ;;  %v1589_v44 = vld [vmem:[#allocation2 + $0x164] ss:$16 sps:$4 sm:$0xff]   ;;  %v1591_v45 = vld [vmem:[#allocation2 + $0x16c] ss:$16 sps:$4 sm:$0xff]   ;;  %v1593_v46 = vld [vmem:[#allocation2 + $0x160] ss:$16 sps:$4 sm:$0xff]  }
  0x23   :  { %v1594_v47 = vld [vmem:[#allocation2 + $0x168] ss:$16 sps:$4 sm:$0xff]   ;;  %v1595_v49 = vld [vmem:[#allocation2 + $0x184] ss:$16 sps:$4 sm:$0xff]   ;;  %v1597_v50 = vld [vmem:[#allocation2 + $0x18c] ss:$16 sps:$4 sm:$0xff]  }
  0x24   :  { %v1621_v48 = vld [vmem:[%s1887_s0 + $0x4] ss:$20 sps:$4 sm:$0xff]   ;;  %v1599_v51 = vld [vmem:[#allocation2 + $0x180] ss:$16 sps:$4 sm:$0xff]   ;;  %v1603_v54 = vld [vmem:[#allocation2 + $0x1ac] ss:$16 sps:$4 sm:$0xff]  }
  0x25   :  { %1053 = vmatpush1.bf16.msra.mxu0 %v1551_v18  ;;  %1182 = vmatpush1.bf16.msra.mxu1 %v1552_v19  ;;  %v1600_v52 = vld [vmem:[#allocation2 + $0x188] ss:$16 sps:$4 sm:$0xff]   ;;  %v1601_v53 = vld [vmem:[#allocation2 + $0x1a4] ss:$16 sps:$4 sm:$0xff]   ;;  %v1605_v55 = vld [vmem:[#allocation2 + $0x1a0] ss:$16 sps:$4 sm:$0xff]  }
  0x26   :  { %1054 = vmatprep.subr.bf16.mxu0 %v1553_v20  ;;  %1183 = vmatprep.subr.bf16.mxu1 %v1555_v21  ;;  %v1606_v56 = vld [vmem:[#allocation2 + $0x1a8] ss:$16 sps:$4 sm:$0xff]   ;;  %v1607_v57 = vld [vmem:[#allocation2 + $0x1c4] ss:$16 sps:$4 sm:$0xff]   ;;  %v1609_v58 = vld [vmem:[#allocation2 + $0x1cc] ss:$16 sps:$4 sm:$0xff]  }
  0x27   :  { %1076 = vmatprep.mubr.bf16.mxu0 %v1621_v48  ;;  %1205 = vmatprep.mubr.bf16.mxu1 %v1621_v48  ;;  %v1611_v59 = vld [vmem:[#allocation2 + $0x1c0] ss:$16 sps:$4 sm:$0xff]   ;;  %v1612_v60 = vld [vmem:[#allocation2 + $0x1c8] ss:$16 sps:$4 sm:$0xff]   ;;  %v1613_v61 = vld [vmem:[#allocation2 + $0x1e4] ss:$16 sps:$4 sm:$0xff]  }
  0x28   :  { %v1615_v62 = vld [vmem:[#allocation2 + $0x1ec] ss:$16 sps:$4 sm:$0xff]   ;;  %v1617_v63 = vld [vmem:[#allocation2 + $0x1e0] ss:$16 sps:$4 sm:$0xff]   ;;  %v1618_v0 = vld [vmem:[#allocation2 + $0x1e8] ss:$16 sps:$4 sm:$0xff]  }
  0x29   :  { %1055 = vmatpush1.bf16.msra.mxu0 %v1557_v22  ;;  %1184 = vmatpush1.bf16.msra.mxu1 %v1558_v23  ;;  %v1624_v1 = vld [vmem:[#allocation2 + $0x204] ss:$16 sps:$4 sm:$0xff]   ;;  %v1627_v2 = vld [vmem:[#allocation2 + $0x20c] ss:$16 sps:$4 sm:$0xff]   ;;  %v1622_v4 = vld [vmem:[#allocation2 + $0x200] ss:$16 sps:$4 sm:$0xff]  }
  0x2a   :  { %1056 = vmatprep.subr.bf16.mxu0 %v1559_v24  ;;  %1185 = vmatprep.subr.bf16.mxu1 %v1561_v25  ;;  %v1619_v3 = vld [vmem:[%s1887_s0] ss:$20 sps:$4 sm:$0xff]   ;;  %v1625_v5 = vld [vmem:[#allocation2 + $0x208] ss:$16 sps:$4 sm:$0xff]   ;;  %v1633_v7 = vld [vmem:[#allocation2 + $0x22c] ss:$16 sps:$4 sm:$0xff]  }
  0x2b   :  { %v1630_v6 = vld [vmem:[#allocation2 + $0x224] ss:$16 sps:$4 sm:$0xff]   ;;  %v1628_v8 = vld [vmem:[#allocation2 + $0x220] ss:$16 sps:$4 sm:$0xff]   ;;  %v1631_v9 = vld [vmem:[#allocation2 + $0x228] ss:$16 sps:$4 sm:$0xff]  }
  0x2c   :  { %v1636_v10 = vld [vmem:[#allocation2 + $0x244] ss:$16 sps:$4 sm:$0xff]   ;;  %v1639_v11 = vld [vmem:[#allocation2 + $0x24c] ss:$16 sps:$4 sm:$0xff]   ;;  %v1634_v12 = vld [vmem:[#allocation2 + $0x240] ss:$16 sps:$4 sm:$0xff]  }
  0x2d   :  { %1057 = vmatpush1.bf16.msra.mxu0 %v1563_v26  ;;  %1186 = vmatpush1.bf16.msra.mxu1 %v1564_v27  ;;  %v1637_v13 = vld [vmem:[#allocation2 + $0x248] ss:$16 sps:$4 sm:$0xff]   ;;  %v1642_v14 = vld [vmem:[#allocation2 + $0x264] ss:$16 sps:$4 sm:$0xff]   ;;  %v1645_v15 = vld [vmem:[#allocation2 + $0x26c] ss:$16 sps:$4 sm:$0xff]  }
  0x2e   :  { %1058 = vmatprep.subr.bf16.mxu0 %v1565_v28  ;;  %1187 = vmatprep.subr.bf16.mxu1 %v1567_v29  ;;  %v1640_v16 = vld [vmem:[#allocation2 + $0x260] ss:$16 sps:$4 sm:$0xff]   ;;  %v1643_v17 = vld [vmem:[#allocation2 + $0x268] ss:$16 sps:$4 sm:$0xff]   ;;  %v1648_v18 = vld [vmem:[#allocation2 + $0x284] ss:$16 sps:$4 sm:$0xff]  }
  0x2f   :  { %v1651_v19 = vld [vmem:[#allocation2 + $0x28c] ss:$16 sps:$4 sm:$0xff]   ;;  %v1646_v20 = vld [vmem:[#allocation2 + $0x280] ss:$16 sps:$4 sm:$0xff]   ;;  %v1649_v21 = vld [vmem:[#allocation2 + $0x288] ss:$16 sps:$4 sm:$0xff]  }
  0x30   :  { %v1654_v22 = vld [vmem:[#allocation2 + $0x2a4] ss:$16 sps:$4 sm:$0xff]   ;;  %v1657_v23 = vld [vmem:[#allocation2 + $0x2ac] ss:$16 sps:$4 sm:$0xff]   ;;  %v1652_v24 = vld [vmem:[#allocation2 + $0x2a0] ss:$16 sps:$4 sm:$0xff]  }
  0x31   :  { %1059 = vmatpush1.bf16.msra.mxu0 %v1569_v30  ;;  %1188 = vmatpush1.bf16.msra.mxu1 %v1570_v31  ;;  %v1655_v25 = vld [vmem:[#allocation2 + $0x2a8] ss:$16 sps:$4 sm:$0xff]   ;;  %v1660_v26 = vld [vmem:[#allocation2 + $0x2c4] ss:$16 sps:$4 sm:$0xff]   ;;  %v1663_v27 = vld [vmem:[#allocation2 + $0x2cc] ss:$16 sps:$4 sm:$0xff]  }
  0x32   :  { %1060 = vmatprep.subr.bf16.mxu0 %v1571_v32  ;;  %1189 = vmatprep.subr.bf16.mxu1 %v1573_v33  ;;  %v1658_v28 = vld [vmem:[#allocation2 + $0x2c0] ss:$16 sps:$4 sm:$0xff]   ;;  %v1661_v29 = vld [vmem:[#allocation2 + $0x2c8] ss:$16 sps:$4 sm:$0xff]   ;;  %v1666_v31 = vld [vmem:[#allocation2 + $0x2e4] ss:$16 sps:$4 sm:$0xff]  }
  0x33   :  { %v1720_v30 = vld [vmem:[%s1887_s0 + $0xc] ss:$20 sps:$4 sm:$0xff]  }
  0x34   :  { %v1669_v32 = vld [vmem:[#allocation2 + $0x2ec] ss:$16 sps:$4 sm:$0xff]   ;;  %v1664_v33 = vld [vmem:[#allocation2 + $0x2e0] ss:$16 sps:$4 sm:$0xff]  }
  0x35   :  { %1061 = vmatpush1.bf16.msra.mxu0 %v1575_v34  ;;  %1190 = vmatpush1.bf16.msra.mxu1 %v1576_v35  ;;  %v1667_v34 = vld [vmem:[#allocation2 + $0x2e8] ss:$16 sps:$4 sm:$0xff]   ;;  %v1672_v35 = vld [vmem:[#allocation2 + $0x304] ss:$16 sps:$4 sm:$0xff]   ;;  %v1693_v48 = vld [vmem:[#allocation2 + $0x36c] ss:$16 sps:$4 sm:$0xff]  }
  0x36   :  { %1062 = vmatprep.subr.bf16.mxu0 %v1577_v36  ;;  %1191 = vmatprep.subr.bf16.mxu1 %v1579_v37  ;;  %v1675_v36 = vld [vmem:[#allocation2 + $0x30c] ss:$16 sps:$4 sm:$0xff]   ;;  %v1670_v37 = vld [vmem:[#allocation2 + $0x300] ss:$16 sps:$4 sm:$0xff]  }
  0x39   :  { %1063 = vmatpush1.bf16.msra.mxu0 %v1581_v38  ;;  %1192 = vmatpush1.bf16.msra.mxu1 %v1582_v39  ;;  %v1673_v38 = vld [vmem:[#allocation2 + $0x308] ss:$16 sps:$4 sm:$0xff]   ;;  %v1678_v39 = vld [vmem:[#allocation2 + $0x324] ss:$16 sps:$4 sm:$0xff]  }
  0x3a   :  { %1064 = vmatprep.subr.bf16.mxu0 %v1583_v40  ;;  %1193 = vmatprep.subr.bf16.mxu1 %v1585_v41  ;;  %v1681_v40 = vld [vmem:[#allocation2 + $0x32c] ss:$16 sps:$4 sm:$0xff]   ;;  %v1676_v41 = vld [vmem:[#allocation2 + $0x320] ss:$16 sps:$4 sm:$0xff]  }
  0x3d   :  { %1065 = vmatpush1.bf16.msra.mxu0 %v1587_v42  ;;  %1194 = vmatpush1.bf16.msra.mxu1 %v1588_v43  ;;  %v1679_v42 = vld [vmem:[#allocation2 + $0x328] ss:$16 sps:$4 sm:$0xff]   ;;  %v1684_v43 = vld [vmem:[#allocation2 + $0x344] ss:$16 sps:$4 sm:$0xff]  }
  0x3e   :  { %1066 = vmatprep.subr.bf16.mxu0 %v1589_v44  ;;  %1195 = vmatprep.subr.bf16.mxu1 %v1591_v45  ;;  %v1687_v44 = vld [vmem:[#allocation2 + $0x34c] ss:$16 sps:$4 sm:$0xff]   ;;  %v1682_v45 = vld [vmem:[#allocation2 + $0x340] ss:$16 sps:$4 sm:$0xff]  }
  0x41   :  { %1067 = vmatpush1.bf16.msra.mxu0 %v1593_v46  ;;  %1196 = vmatpush1.bf16.msra.mxu1 %v1594_v47  ;;  %v1685_v46 = vld [vmem:[#allocation2 + $0x348] ss:$16 sps:$4 sm:$0xff]   ;;  %v1690_v47 = vld [vmem:[#allocation2 + $0x364] ss:$16 sps:$4 sm:$0xff]  }
  0x42   :  { %1068 = vmatprep.subr.bf16.mxu0 %v1595_v49  ;;  %1197 = vmatprep.subr.bf16.mxu1 %v1597_v50  ;;  %v1688_v49 = vld [vmem:[#allocation2 + $0x360] ss:$16 sps:$4 sm:$0xff]   ;;  %v1691_v50 = vld [vmem:[#allocation2 + $0x368] ss:$16 sps:$4 sm:$0xff]  }
  0x45   :  { %1069 = vmatpush1.bf16.msra.mxu0 %v1599_v51  ;;  %1198 = vmatpush1.bf16.msra.mxu1 %v1600_v52  ;;  %v1696_v51 = vld [vmem:[#allocation2 + $0x384] ss:$16 sps:$4 sm:$0xff]   ;;  %v1699_v52 = vld [vmem:[#allocation2 + $0x38c] ss:$16 sps:$4 sm:$0xff]  }
  0x46   :  { %1070 = vmatprep.subr.bf16.mxu0 %v1601_v53  ;;  %1199 = vmatprep.subr.bf16.mxu1 %v1603_v54  ;;  %v1694_v53 = vld [vmem:[#allocation2 + $0x380] ss:$16 sps:$4 sm:$0xff]   ;;  %v1697_v54 = vld [vmem:[#allocation2 + $0x388] ss:$16 sps:$4 sm:$0xff]  }
  0x49   :  { %1071 = vmatpush1.bf16.msra.mxu0 %v1605_v55  ;;  %1200 = vmatpush1.bf16.msra.mxu1 %v1606_v56  ;;  %v1702_v55 = vld [vmem:[#allocation2 + $0x3a4] ss:$16 sps:$4 sm:$0xff]   ;;  %v1705_v56 = vld [vmem:[#allocation2 + $0x3ac] ss:$16 sps:$4 sm:$0xff]  }
  0x4a   :  { %1072 = vmatprep.subr.bf16.mxu0 %v1607_v57  ;;  %1201 = vmatprep.subr.bf16.mxu1 %v1609_v58  ;;  %v1700_v57 = vld [vmem:[#allocation2 + $0x3a0] ss:$16 sps:$4 sm:$0xff]   ;;  %v1703_v58 = vld [vmem:[#allocation2 + $0x3a8] ss:$16 sps:$4 sm:$0xff]  }
  0x4d   :  { %1073 = vmatpush1.bf16.msra.mxu0 %v1611_v59  ;;  %1202 = vmatpush1.bf16.msra.mxu1 %v1612_v60  ;;  %v1708_v59 = vld [vmem:[#allocation2 + $0x3c4] ss:$16 sps:$4 sm:$0xff]   ;;  %v1711_v60 = vld [vmem:[#allocation2 + $0x3cc] ss:$16 sps:$4 sm:$0xff]  }
  0x4e   :  { %1074 = vmatprep.subr.bf16.mxu0 %v1613_v61  ;;  %1203 = vmatprep.subr.bf16.mxu1 %v1615_v62  ;;  %v1706_v61 = vld [vmem:[#allocation2 + $0x3c0] ss:$16 sps:$4 sm:$0xff]   ;;  %v1709_v62 = vld [vmem:[#allocation2 + $0x3c8] ss:$16 sps:$4 sm:$0xff]  }
  0x51   :  { %1075 = vmatpush1.bf16.msra.mxu0 %v1617_v63  ;;  %1204 = vmatpush1.bf16.msra.mxu1 %v1618_v0  ;;  %v1714_v63 = vld [vmem:[#allocation2 + $0x3e4] ss:$16 sps:$4 sm:$0xff]   ;;  %v1717_v0 = vld [vmem:[#allocation2 + $0x3ec] ss:$16 sps:$4 sm:$0xff]  }
  0x52   :  { %1087 = vmatprep.subr.bf16.mxu0 %v1624_v1  ;;  %1216 = vmatprep.subr.bf16.mxu1 %v1627_v2  ;;  %v1712_v1 = vld [vmem:[#allocation2 + $0x3e0] ss:$16 sps:$4 sm:$0xff]   ;;  %v1715_v2 = vld [vmem:[#allocation2 + $0x3e8] ss:$16 sps:$4 sm:$0xff]  }
  0x54   :  { %1077 = vmatmul.mubr.bf16.vlgmr.msra.gmra.mrb[0].mxu0 %v1619_v3  ;;  %1206 = vmatmul.mubr.bf16.vlgmr.msra.gmra.mrb[0].mxu1 %v1619_v3  ;;  %v1723_v3 = vld [vmem:[#allocation2 + $0x404] ss:$16 sps:$4 sm:$0xff]  }
  0x55   :  { %1088 = vmatpush1.bf16.msra.mxu0 %v1622_v4  ;;  %1217 = vmatpush1.bf16.msra.mxu1 %v1625_v5  ;;  %v1726_v4 = vld [vmem:[#allocation2 + $0x40c] ss:$16 sps:$4 sm:$0xff]  }
  0x56   :  { %1089 = vmatprep.subr.bf16.mxu0 %v1630_v6  ;;  %1218 = vmatprep.subr.bf16.mxu1 %v1633_v7  ;;  %v1718_v5 = vld [vmem:[%s1887_s0 + $0x8] ss:$20 sps:$4 sm:$0xff]   ;;  %v1721_v6 = vld [vmem:[#allocation2 + $0x400] ss:$16 sps:$4 sm:$0xff]  }
  0x57   :  { %1119 = vmatprep.mubr.bf16.mxu0 %v1720_v30  ;;  %1248 = vmatprep.mubr.bf16.mxu1 %v1720_v30  ;;  %v1724_v7 = vld [vmem:[#allocation2 + $0x408] ss:$16 sps:$4 sm:$0xff]   ;;  %v1762_v30 = vld [vmem:[#allocation2 + $0x4cc] ss:$16 sps:$4 sm:$0xff]  }
  0x59   :  { %1090 = vmatpush1.bf16.msra.mxu0 %v1628_v8  ;;  %1219 = vmatpush1.bf16.msra.mxu1 %v1631_v9  ;;  %v1729_v8 = vld [vmem:[#allocation2 + $0x424] ss:$16 sps:$4 sm:$0xff]   ;;  %v1732_v9 = vld [vmem:[#allocation2 + $0x42c] ss:$16 sps:$4 sm:$0xff]  }
  0x5a   :  { %1091 = vmatprep.subr.bf16.mxu0 %v1636_v10  ;;  %1220 = vmatprep.subr.bf16.mxu1 %v1639_v11  ;;  %v1727_v10 = vld [vmem:[#allocation2 + $0x420] ss:$16 sps:$4 sm:$0xff]   ;;  %v1730_v11 = vld [vmem:[#allocation2 + $0x428] ss:$16 sps:$4 sm:$0xff]  }
  0x5d   :  { %1092 = vmatpush1.bf16.msra.mxu0 %v1634_v12  ;;  %1221 = vmatpush1.bf16.msra.mxu1 %v1637_v13  ;;  %v1735_v12 = vld [vmem:[#allocation2 + $0x444] ss:$16 sps:$4 sm:$0xff]   ;;  %v1738_v13 = vld [vmem:[#allocation2 + $0x44c] ss:$16 sps:$4 sm:$0xff]  }
  0x5e   :  { %1093 = vmatprep.subr.bf16.mxu0 %v1642_v14  ;;  %1222 = vmatprep.subr.bf16.mxu1 %v1645_v15  ;;  %v1821_v14 = vmov 0   ;;  %v1733_v15 = vld [vmem:[#allocation2 + $0x440] ss:$16 sps:$4 sm:$0xff]  }
  0x61   :  { %1094 = vmatpush1.bf16.msra.mxu0 %v1640_v16  ;;  %1223 = vmatpush1.bf16.msra.mxu1 %v1643_v17  ;;  %v1736_v16 = vld [vmem:[#allocation2 + $0x448] ss:$16 sps:$4 sm:$0xff]   ;;  %v1741_v17 = vld [vmem:[#allocation2 + $0x464] ss:$16 sps:$4 sm:$0xff]  }
  0x62   :  { %1095 = vmatprep.subr.bf16.mxu0 %v1648_v18  ;;  %1224 = vmatprep.subr.bf16.mxu1 %v1651_v19  ;;  %v1744_v18 = vld [vmem:[#allocation2 + $0x46c] ss:$16 sps:$4 sm:$0xff]   ;;  %v1739_v19 = vld [vmem:[#allocation2 + $0x460] ss:$16 sps:$4 sm:$0xff]  }
  0x65   :  { %1096 = vmatpush1.bf16.msra.mxu0 %v1646_v20  ;;  %1225 = vmatpush1.bf16.msra.mxu1 %v1649_v21  ;;  %v1742_v20 = vld [vmem:[#allocation2 + $0x468] ss:$16 sps:$4 sm:$0xff]   ;;  %v1747_v21 = vld [vmem:[#allocation2 + $0x484] ss:$16 sps:$4 sm:$0xff]  }
  0x66   :  { %1097 = vmatprep.subr.bf16.mxu0 %v1654_v22  ;;  %1226 = vmatprep.subr.bf16.mxu1 %v1657_v23  ;;  %v1750_v22 = vld [vmem:[#allocation2 + $0x48c] ss:$16 sps:$4 sm:$0xff]   ;;  %v1745_v23 = vld [vmem:[#allocation2 + $0x480] ss:$16 sps:$4 sm:$0xff]  }
  0x69   :  { %1098 = vmatpush1.bf16.msra.mxu0 %v1652_v24  ;;  %1227 = vmatpush1.bf16.msra.mxu1 %v1655_v25  ;;  %v1748_v24 = vld [vmem:[#allocation2 + $0x488] ss:$16 sps:$4 sm:$0xff]   ;;  %v1753_v25 = vld [vmem:[#allocation2 + $0x4a4] ss:$16 sps:$4 sm:$0xff]  }
  0x6a   :  { %1099 = vmatprep.subr.bf16.mxu0 %v1660_v26  ;;  %1228 = vmatprep.subr.bf16.mxu1 %v1663_v27  ;;  %v1756_v26 = vld [vmem:[#allocation2 + $0x4ac] ss:$16 sps:$4 sm:$0xff]   ;;  %v1751_v27 = vld [vmem:[#allocation2 + $0x4a0] ss:$16 sps:$4 sm:$0xff]  }
  0x6d   :  { %1100 = vmatpush1.bf16.msra.mxu0 %v1658_v28  ;;  %1229 = vmatpush1.bf16.msra.mxu1 %v1661_v29  ;;  %v1754_v28 = vld [vmem:[#allocation2 + $0x4a8] ss:$16 sps:$4 sm:$0xff]   ;;  %v1759_v29 = vld [vmem:[#allocation2 + $0x4c4] ss:$16 sps:$4 sm:$0xff]  }
  0x6e   :  { %1101 = vmatprep.subr.bf16.mxu0 %v1666_v31  ;;  %1230 = vmatprep.subr.bf16.mxu1 %v1669_v32  ;;  %v1757_v31 = vld [vmem:[#allocation2 + $0x4c0] ss:$16 sps:$4 sm:$0xff]   ;;  %v1760_v32 = vld [vmem:[#allocation2 + $0x4c8] ss:$16 sps:$4 sm:$0xff]  }
  0x71   :  { %1102 = vmatpush1.bf16.msra.mxu0 %v1664_v33  ;;  %1231 = vmatpush1.bf16.msra.mxu1 %v1667_v34  ;;  %v1765_v33 = vld [vmem:[#allocation2 + $0x4e4] ss:$16 sps:$4 sm:$0xff]   ;;  %v1768_v34 = vld [vmem:[#allocation2 + $0x4ec] ss:$16 sps:$4 sm:$0xff]  }
  0x72   :  { %1103 = vmatprep.subr.bf16.mxu0 %v1672_v35  ;;  %1232 = vmatprep.subr.bf16.mxu1 %v1675_v36  ;;  %v1763_v35 = vld [vmem:[#allocation2 + $0x4e0] ss:$16 sps:$4 sm:$0xff]   ;;  %v1766_v36 = vld [vmem:[#allocation2 + $0x4e8] ss:$16 sps:$4 sm:$0xff]  }
  0x75   :  { %1104 = vmatpush1.bf16.msra.mxu0 %v1670_v37  ;;  %1233 = vmatpush1.bf16.msra.mxu1 %v1673_v38  ;;  %v1769_v37 = vld [vmem:[%s1887_s0 + $0x10] ss:$20 sps:$4 sm:$0xff]   ;;  %v198_v38 = vlaneseq  ;;  %s1822_s0 = smov [#allocation5]  }
  0x76   :  { %1105 = vmatprep.subr.bf16.mxu0 %v1678_v39  ;;  %1234 = vmatprep.subr.bf16.mxu1 %v1681_v40  ;;  %s1315_s10 = sshll.u32 %s1822_s0, 4  ;;  %s1316_s10 = int_to_ptr.vmem [resolvable:$true] %s1315_s10 }
  0x77   :  { %v199_v39 = vshrl.u32 %v198_v38, 7  ;;  %p1797_p9 = scmp.lt.s32.totalorder %s1316_s10, %s1316_s10 }
  0x79   :  { %1106 = vmatpush1.bf16.msra.mxu0 %v1676_v41  ;;  %1235 = vmatpush1.bf16.msra.mxu1 %v1679_v42  ;;  %v200_v40 = vsub.s32 0, %v199_v39  ;;  %v208_v41 = vsub.s32 2, %v199_v39  ;;  %v196_v42 = vld [vmem:[%s1889_s2] sm:$0xf]  ;;  %s1792_s2 = scalar_lea.vmem %s1316_s10, 1024 }
  0x7a   :  { %1107 = vmatprep.subr.bf16.mxu0 %v1684_v43  ;;  %1236 = vmatprep.subr.bf16.mxu1 %v1687_v44  ;;  %v204_v43 = vsub.s32 1, %v199_v39  ;;  %v212_v44 = vsub.s32 3, %v199_v39  ;;  %p1793_p8 = scmp.ne.s32.totalorder %s1316_s10, %s1792_s2  ;;  %p1798_p10 = scmp.lt.s32.totalorder %s1792_s2, %s1792_s2 }
  0x7c   :  { %p1799_p11 = por %p1798_p10, %p1797_p9 }
  0x7d   :  { %1108 = vmatpush1.bf16.msra.mxu0 %v1682_v45  ;;  %1237 = vmatpush1.bf16.msra.mxu1 %v1685_v46  ;;  %v201_v45 = vrot.slane %v196_v42, %v200_v40  ;;  %v209_v46 = vrot.slane %v196_v42, %v208_v41 }
  0x7e   :  { %1109 = vmatprep.subr.bf16.mxu0 %v1690_v47  ;;  %1238 = vmatprep.subr.bf16.mxu1 %v1693_v48  ;;  %v205_v47 = vrot.slane %v196_v42, %v204_v43  ;;  %v213_v48 = vrot.slane %v196_v42, %v212_v44  ;;  %p1800_p12 = pnand %p1799_p11, %p1793_p8 }
  0x81   :  { %1110 = vmatpush1.bf16.msra.mxu0 %v1688_v49  ;;  %1239 = vmatpush1.bf16.msra.mxu1 %v1691_v50 }
  0x82   :  { %1111 = vmatprep.subr.bf16.mxu0 %v1696_v51  ;;  %1240 = vmatprep.subr.bf16.mxu1 %v1699_v52 }
  0x85   :  { %1112 = vmatpush1.bf16.msra.mxu0 %v1694_v53  ;;  %1241 = vmatpush1.bf16.msra.mxu1 %v1697_v54 }
  0x86   :  { %1113 = vmatprep.subr.bf16.mxu0 %v1702_v55  ;;  %1242 = vmatprep.subr.bf16.mxu1 %v1705_v56 }
  0x89   :  { %1114 = vmatpush1.bf16.msra.mxu0 %v1700_v57  ;;  %1243 = vmatpush1.bf16.msra.mxu1 %v1703_v58 }
  0x8a   :  { %1115 = vmatprep.subr.bf16.mxu0 %v1708_v59  ;;  %1244 = vmatprep.subr.bf16.mxu1 %v1711_v60 }
  0x8d   :  { %1116 = vmatpush1.bf16.msra.mxu0 %v1706_v61  ;;  %1245 = vmatpush1.bf16.msra.mxu1 %v1709_v62 }
  0x8e   :  { %1117 = vmatprep.subr.bf16.mxu0 %v1714_v63  ;;  %1246 = vmatprep.subr.bf16.mxu1 %v1717_v0 }
  0x91   :  { %1118 = vmatpush1.bf16.msra.mxu0 %v1712_v1  ;;  %1247 = vmatpush1.bf16.msra.mxu1 %v1715_v2 }
  0x92   :  { %1130 = vmatprep.subr.bf16.mxu0 %v1723_v3  ;;  %1259 = vmatprep.subr.bf16.mxu1 %v1726_v4 }
  0x94   :  { %1120 = vmatmul.mubr.bf16.vlgmr.msra.gmra.mrb[0].mxu0 %v1718_v5  ;;  %1249 = vmatmul.mubr.bf16.vlgmr.msra.gmra.mrb[0].mxu1 %v1718_v5 }
  0x95   :  { %1131 = vmatpush1.bf16.msra.mxu0 %v1721_v6  ;;  %1260 = vmatpush1.bf16.msra.mxu1 %v1724_v7 }
  0x96   :  { %1132 = vmatprep.subr.bf16.mxu0 %v1729_v8  ;;  %1261 = vmatprep.subr.bf16.mxu1 %v1732_v9 }
  0x97   :  { %1162 = vmatprep.mubr.bf16.mxu0 %v1821_v14  ;;  %1291 = vmatprep.mubr.bf16.mxu1 %v1821_v14 }
  0x99   :  { %1133 = vmatpush1.bf16.msra.mxu0 %v1727_v10  ;;  %1262 = vmatpush1.bf16.msra.mxu1 %v1730_v11 }
  0x9a   :  { %1134 = vmatprep.subr.bf16.mxu0 %v1735_v12  ;;  %1263 = vmatprep.subr.bf16.mxu1 %v1738_v13 }
  0x9d   :  { %1135 = vmatpush1.bf16.msra.mxu0 %v1733_v15  ;;  %1264 = vmatpush1.bf16.msra.mxu1 %v1736_v16 }
  0x9e   :  { %1136 = vmatprep.subr.bf16.mxu0 %v1741_v17  ;;  %1265 = vmatprep.subr.bf16.mxu1 %v1744_v18 }
  0xa1   :  { %1137 = vmatpush1.bf16.msra.mxu0 %v1739_v19  ;;  %1266 = vmatpush1.bf16.msra.mxu1 %v1742_v20 }
  0xa2   :  { %1138 = vmatprep.subr.bf16.mxu0 %v1747_v21  ;;  %1267 = vmatprep.subr.bf16.mxu1 %v1750_v22 }
  0xa5   :  { %1139 = vmatpush1.bf16.msra.mxu0 %v1745_v23  ;;  %1268 = vmatpush1.bf16.msra.mxu1 %v1748_v24 }
  0xa6   :  { %1140 = vmatprep.subr.bf16.mxu0 %v1753_v25  ;;  %1269 = vmatprep.subr.bf16.mxu1 %v1756_v26 }
  0xa9   :  { %1141 = vmatpush1.bf16.msra.mxu0 %v1751_v27  ;;  %1270 = vmatpush1.bf16.msra.mxu1 %v1754_v28 }
  0xaa   :  { %1142 = vmatprep.subr.bf16.mxu0 %v1759_v29  ;;  %1271 = vmatprep.subr.bf16.mxu1 %v1762_v30 }
  0xad   :  { %1143 = vmatpush1.bf16.msra.mxu0 %v1757_v31  ;;  %1272 = vmatpush1.bf16.msra.mxu1 %v1760_v32 }
  0xae   :  { %1144 = vmatprep.subr.bf16.mxu0 %v1765_v33  ;;  %1273 = vmatprep.subr.bf16.mxu1 %v1768_v34 }
  0xb1   :  { %1145 = vmatpush1.bf16.msra.mxu0 %v1763_v35  ;;  %1274 = vmatpush1.bf16.msra.mxu1 %v1766_v36 }
  0xb4   :  { %1163 = vmatmul.mubr.bf16.vlgmr.msra.gmra.mrb[0].mxu0 %v1769_v37  ;;  %1292 = vmatmul.mubr.bf16.vlgmr.msra.gmra.mrb[0].mxu1 %v1769_v37 }
 0x187   :  { %v1164_v49 = vpop.f32.mrb[0].mxu0  ;;  %v1293_v50 = vpop.f32.mrb[0].mxu1 }
 0x188   :  { %v1492_v51 = vadd.f32 %v1164_v49, %v201_v45  ;;  %v1496_v52 = vadd.f32 %v1293_v50, %v209_v46  ;;  %v1166_v53 = vpop.f32.mrb[1].mxu0  ;;  %v1295_v54 = vpop.f32.mrb[1].mxu1 }
 0x189   :  { %v1493_v55 = vadd.f32 %v1166_v53, %v205_v47  ;;  %v1497_v56 = vadd.f32 %v1295_v54, %v213_v48  ;;  %v1168_v57 = vpop.f32.mrb[2].mxu0  ;;  %v1297_v58 = vpop.f32.mrb[2].mxu1 }
 0x18a   :  { %1302 = vst [vmem:[#allocation5] sm:$0xff] %v1492_v51  ;;  %1304 = vst [vmem:[#allocation5 + $0x10] sm:$0xff] %v1496_v52  ;;  %v1494_v59 = vadd.f32 %v1168_v57, %v201_v45  ;;  %v1498_v60 = vadd.f32 %v1297_v58, %v209_v46  ;;  %v1170_v61 = vpop.f32.mrb[3].mxu0  ;;  %v1299_v62 = vpop.f32.mrb[3].mxu1 }
 0x18b   :  { %1303 = vst [vmem:[#allocation5 + $0x8] sm:$0xff] %v1493_v55  ;;  %1305 = vst [vmem:[#allocation5 + $0x18] sm:$0xff] %v1497_v56  ;;  %v1495_v63 = vadd.f32 %v1170_v61, %v205_v47  ;;  %v1499_v0 = vadd.f32 %v1299_v62, %v213_v48 }
 0x18c   :  { %1306 = vst [vmem:[#allocation5 + $0x20] sm:$0xff] %v1494_v59  ;;  %1308 = vst [vmem:[#allocation5 + $0x30] sm:$0xff] %v1498_v60 }
 0x18d   :  { %1307 = vst [vmem:[#allocation5 + $0x28] sm:$0xff] %v1495_v63  ;;  %1309 = vst [vmem:[#allocation5 + $0x38] sm:$0xff] %v1499_v0 }
 0x18e   :  { %1803 = shalt.err (!%p1800_p12)
}
 0x18f   :  { %s1804_s13 = scalar_lea.hbm %s1890_s3, 1024 }
 0x190   :  { %p1805_p13 = scmp.ne.s32.totalorder %s1890_s3, %s1804_s13  ;;  %p1808_p0 = scmp.lt.u32.totalorder %s1804_s13, %s1890_s3 }
 0x192   :  { %p1810_p1 = pnand %p1808_p0, %p1805_p13 }
 0x194   :  { %1813 = shalt.err (!%p1810_p1)
}
 0x195   :  { %s1823_s18 = smov 512   ;;  %s1824_s19 = smov 32  }
 0x196   :  { %1321 = dma.vmem_to_hbm [thread:$0]  %s1316_s10, 1024, %s1890_s3, [#allocation4], %s1823_s18, %s1823_s18, %s1824_s19  }
 0x197   :  { %1816 = dma.done.wait [#allocation4], 1024  }
 0x198   :  { %1817 = vsyncadd [#allocation4], 4294966272 }
 0x199   :  { %1325 = vsyncpa [#allocation3], 1 }
 0x19a   :  { %1326 = vsyncpa [#allocation4], 1 }

</bundles_post_ra>
